<compile_context>
chip_gen: v7x
topology: tpu7x:2x2x1
jax: 0.10.0
libtpu: 0.0.40
codegen_flags: <defaults>
</compile_context>

<pallas_src>
import functools

import jax
import jax.numpy as jnp
from jax.experimental import pallas as pl
from jax.experimental.pallas import tpu as pltpu

# Logical hidden sizes and lane-aligned padded hidden size.
H1, H2, H3 = 500, 400, 400
H_PAD = 512


def _round_up(n, m):
    return ((n + m - 1) // m) * m


def _tpu_defaults():
    """Generation-aware defaults: (tile_b, min_grid_steps, tanh_bf16, single_buf_params)."""
    kind = ""
    try:
        kind = jax.devices()[0].device_kind.lower()
    except Exception:
        pass
    is_v5e = ("v5 lite" in kind) or ("v5e" in kind) or ("v5litepod" in kind)
    is_v7 = ("v7" in kind) or ("tpu7" in kind)
    tile_b = 512 if is_v5e else 1024          # v5e MXU is ~5x slower; 512 already amortizes step overhead
    min_steps = 2 if is_v7 else 1             # keep both v7x TensorCores busy
    tanh_bf16 = not is_v5e                    # v5e has no bf16 VPU/EUP
    single_buf = is_v7                        # 64 MiB VMEM on v7x -> single-buffer resident params
    return tile_b, min_steps, tanh_bf16, single_buf


def _mlp_kernel(x_ref,
                w1_ref, b1_ref,
                w2_ref, b2_ref,
                w3_ref, b3_ref,
                w4_ref, b4_ref,
                o_ref, *, tanh_bf16):
    # x tile: (TB, F) f32 -> cast to bf16 in-kernel (no wrapper HBM pass).
    act_dtype = jnp.bfloat16 if tanh_bf16 else jnp.float32
    h = x_ref[...].astype(jnp.bfloat16)
    for w_ref, b_ref in ((w1_ref, b1_ref), (w2_ref, b2_ref), (w3_ref, b3_ref)):
        acc = jnp.dot(h, w_ref[...], preferred_element_type=jnp.float32) + b_ref[...]
        h = jnp.tanh(acc.astype(act_dtype)).astype(jnp.bfloat16)
    y = jnp.dot(h, w4_ref[...], preferred_element_type=jnp.float32) + b4_ref[...]
    o_ref[...] = y.astype(o_ref.dtype)


def fnn_model_v2_forward(x, params, *, tile_b=None, out_dtype=jnp.float32):
    """x: (B, num_features) f32. Returns (B, num_labels) `out_dtype`."""
    B, F = x.shape
    L = params["num_labels"]
    assert params["w1"].shape[0] == F, "feature dim mismatch with params"

    d_tile_b, min_steps, tanh_bf16, single_buf = _tpu_defaults()
    if tile_b is None:
        tile_b = d_tile_b

    # Tile selection: minimize dead rows, keep tiles a multiple of 16 rows,
    # and (on v7x) keep at least `min_steps` grid steps for 2-core sharding.
    n_tiles = max(1, pl.cdiv(B, tile_b))
    if min_steps > 1 and B > 16 * min_steps:
        n_tiles = max(n_tiles, min_steps)
    tb = _round_up(pl.cdiv(B, n_tiles), 16)
    grid = (pl.cdiv(B, tb),)

    operands = (
        x,
        params["w1"], params["b1"],
        params["w2"], params["b2"],
        params["w3"], params["b3"],
        params["w4"], params["b4"],
    )

    param_keys = ("w1", "b1", "w2", "b2", "w3", "b3", "w4", "b4")
    param_bytes = sum(int(params[k].size) * params[k].dtype.itemsize
                      for k in param_keys)
    out_itemsize = jnp.dtype(out_dtype).itemsize

    rows_computed = grid[0] * tb
    flops = 2 * rows_computed * (F * H_PAD + 2 * H_PAD * H_PAD + H_PAD * L)
    transcendentals = rows_computed * 3 * H_PAD
    bytes_accessed = B * F * 4 + param_bytes + B * L * out_itemsize

    # Rough VMEM budget: double-buffered x/out blocks, params (1x or 2x),
    # plus headroom for f32/bf16 intermediates of the 4 chained layers.
    vmem_est = (2 * tb * F * 4
                + 2 * tb * L * out_itemsize
                + (1 if single_buf else 2) * param_bytes
                + 4 * tb * H_PAD * 4)
    vmem_limit = int(min(56 * 2 ** 20, max(32 * 2 ** 20, int(1.3 * vmem_est))))

    def build(use_single_buffer):
        def resident(arr):
            # Same block index every grid step -> stays resident in VMEM.
            if use_single_buffer:
                return pl.BlockSpec(arr.shape, lambda i: (0, 0),
                                    pipeline_mode=pl.Buffered(1))
            return pl.BlockSpec(arr.shape, lambda i: (0, 0))

        in_specs = [pl.BlockSpec((tb, F), lambda i: (i, 0))]
        in_specs += [resident(op) for op in operands[1:]]

        return pl.pallas_call(
            functools.partial(_mlp_kernel, tanh_bf16=tanh_bf16),
            out_shape=jax.ShapeDtypeStruct((B, L), out_dtype),
            grid=grid,
            in_specs=in_specs,
            out_specs=pl.BlockSpec((tb, L), lambda i: (i, 0)),
            compiler_params=pltpu.CompilerParams(
                dimension_semantics=("parallel",),
                vmem_limit_bytes=vmem_limit),
            cost_estimate=pl.CostEstimate(
                flops=flops,
                transcendentals=transcendentals,
                bytes_accessed=bytes_accessed),
        )

    if single_buf:
        try:
            return build(True)(*operands)
        except Exception:
            pass  # fall back to default buffering if Buffered(1) is rejected
    return build(False)(*operands)


def init_params(key, num_features, num_labels):
    """PyTorch-like uniform(+/- 1/sqrt(fan_in)) init.

    Weights stored transposed vs torch.nn.Linear, i.e. (in, out).  Hidden dims
    are zero-padded 500/400 -> 512 and weights cast to bf16; feature and label
    dims stay at their logical sizes.  Biases are (1, out_pad) f32.  Unpadded
    f32 copies are kept for the reference implementation.
    """
    dims = [
        (num_features, H1, num_features, H_PAD),
        (H1, H2, H_PAD, H_PAD),
        (H2, H3, H_PAD, H_PAD),
        (H3, num_labels, H_PAD, num_labels),
    ]
    params = {"num_features": num_features, "num_labels": num_labels}
    for idx, (fan_in, fan_out, in_pad, out_pad) in enumerate(dims, start=1):
        key, kw, kb = jax.random.split(key, 3)
        bound = 1.0 / (fan_in ** 0.5)
        w = jax.random.uniform(kw, (fan_in, fan_out), jnp.float32,
                               minval=-bound, maxval=bound)
        b = jax.random.uniform(kb, (fan_out,), jnp.float32,
                               minval=-bound, maxval=bound)
        w_p = jnp.zeros((in_pad, out_pad), jnp.float32).at[:fan_in, :fan_out].set(w)
        b_p = jnp.zeros((1, out_pad), jnp.float32).at[0, :fan_out].set(b)
        params[f"w{idx}"] = w_p.astype(jnp.bfloat16)
        params[f"b{idx}"] = b_p
        params[f"w{idx}_f32"] = w
        params[f"b{idx}_f32"] = b[None, :]
    return params


def reference_forward_matched(x, params, tanh_bf16=None):
    """Same numerics as the kernel: bf16 operands, f32 accumulate, same tanh dtype."""
    if tanh_bf16 is None:
        tanh_bf16 = _tpu_defaults()[2]
    act = jnp.bfloat16 if tanh_bf16 else jnp.float32
    h = x.astype(jnp.bfloat16)
    for i in (1, 2, 3):
        acc = jnp.dot(h, params[f"w{i}"],
                      preferred_element_type=jnp.float32) + params[f"b{i}"]
        h = jnp.tanh(acc.astype(act)).astype(jnp.bfloat16)
    return jnp.dot(h, params["w4"],
                   preferred_element_type=jnp.float32) + params["b4"]


def reference_forward_f32(x, params):
    """Full-precision, unpadded reference (loose sanity check)."""
    h = jnp.tanh(x @ params["w1_f32"] + params["b1_f32"])
    h = jnp.tanh(h @ params["w2_f32"] + params["b2_f32"])
    h = jnp.tanh(h @ params["w3_f32"] + params["b3_f32"])
    return h @ params["w4_f32"] + params["b4_f32"]


if __name__ == "__main__":
    num_features = 32
    num_labels = 8
    batch = 16

    key = jax.random.PRNGKey(0)
    key, kx = jax.random.split(key)
    x = jax.random.normal(kx, (batch, num_features), jnp.float32)
    params = init_params(key, num_features, num_labels)

    y = fnn_model_v2_forward(x, params)
    y = jax.block_until_ready(y)
    assert y.shape == (batch, num_labels)

    y_ref_bf16 = reference_forward_matched(x, params)
    y_ref_f32 = reference_forward_f32(x, params)

    assert jnp.allclose(y, y_ref_bf16, atol=5e-3, rtol=5e-3), \
        "mismatch vs bf16-matched JAX reference"
    assert jnp.allclose(y, y_ref_f32, atol=3e-2, rtol=3e-2), \
        "mismatch vs f32 JAX reference"

    print("KERNEL_OK")
</pallas_src>

<mosaic_0001>
module attributes {stable_mosaic.version = 11 : i64} {
  func.func @_mlp_kernel(%arg0: i32, %arg1: memref<16x32xf32, #tpu.memory_space<vmem>>, %arg2: memref<32x512xbf16, #tpu.memory_space<vmem>>, %arg3: memref<1x512xf32, #tpu.memory_space<vmem>>, %arg4: memref<512x512xbf16, #tpu.memory_space<vmem>>, %arg5: memref<1x512xf32, #tpu.memory_space<vmem>>, %arg6: memref<512x512xbf16, #tpu.memory_space<vmem>>, %arg7: memref<1x512xf32, #tpu.memory_space<vmem>>, %arg8: memref<512x8xbf16, #tpu.memory_space<vmem>>, %arg9: memref<1x8xf32, #tpu.memory_space<vmem>>, %arg10: memref<16x8xf32, #tpu.memory_space<vmem>>) attributes {dimension_semantics = [#tpu.dimension_semantics<parallel>], iteration_bounds = array<i64: 1>, scalar_prefetch = 0 : i64, scratch_operands = 0 : i64, tpu.core_type = #tpu.core_type<tc>, window_params = [{transform_indices = @transform_0, window_bounds = array<i64: 16, 32>}, {pipeline_mode = #tpu.pipeline_mode<synchronous>, transform_indices = @transform_1, window_bounds = array<i64: 32, 512>}, {pipeline_mode = #tpu.pipeline_mode<synchronous>, transform_indices = @transform_2, window_bounds = array<i64: 1, 512>}, {pipeline_mode = #tpu.pipeline_mode<synchronous>, transform_indices = @transform_3, window_bounds = array<i64: 512, 512>}, {pipeline_mode = #tpu.pipeline_mode<synchronous>, transform_indices = @transform_4, window_bounds = array<i64: 1, 512>}, {pipeline_mode = #tpu.pipeline_mode<synchronous>, transform_indices = @transform_5, window_bounds = array<i64: 512, 512>}, {pipeline_mode = #tpu.pipeline_mode<synchronous>, transform_indices = @transform_6, window_bounds = array<i64: 1, 512>}, {pipeline_mode = #tpu.pipeline_mode<synchronous>, transform_indices = @transform_7, window_bounds = array<i64: 512, 8>}, {pipeline_mode = #tpu.pipeline_mode<synchronous>, transform_indices = @transform_8, window_bounds = array<i64: 1, 8>}, {transform_indices = @transform_9, window_bounds = array<i64: 16, 8>}]} {
    %c0 = arith.constant 0 : index
    %c0_0 = arith.constant 0 : index
    %0 = vector.load %arg1[%c0, %c0_0] : memref<16x32xf32, #tpu.memory_space<vmem>>, vector<16x32xf32>
    %1 = arith.truncf %0 : vector<16x32xf32> to vector<16x32xbf16>
    %c0_1 = arith.constant 0 : index
    %c0_2 = arith.constant 0 : index
    %2 = vector.load %arg2[%c0_1, %c0_2] : memref<32x512xbf16, #tpu.memory_space<vmem>>, vector<32x512xbf16>
    %cst = arith.constant dense<0.000000e+00> : vector<16x512xf32>
    %3 = tpu.matmul %1, %2, %cst {dimension_numbers = #tpu.dot_dimension_numbers<[1], [0], [0], [1], [0, 0, 1, 1], [], []>} : vector<16x32xbf16>, vector<32x512xbf16>, vector<16x512xf32> -> vector<16x512xf32>
    %c0_3 = arith.constant 0 : index
    %c0_4 = arith.constant 0 : index
    %4 = vector.load %arg3[%c0_3, %c0_4] : memref<1x512xf32, #tpu.memory_space<vmem>>, vector<1x512xf32>
    %5 = vector.broadcast %4 : vector<1x512xf32> to vector<16x512xf32>
    %6 = arith.addf %3, %5 : vector<16x512xf32>
    %7 = arith.truncf %6 : vector<16x512xf32> to vector<16x512xbf16>
    %8 = math.tanh %7 : vector<16x512xbf16>
    %c0_5 = arith.constant 0 : index
    %c0_6 = arith.constant 0 : index
    %9 = vector.load %arg4[%c0_5, %c0_6] : memref<512x512xbf16, #tpu.memory_space<vmem>>, vector<512x512xbf16>
    %cst_7 = arith.constant dense<0.000000e+00> : vector<16x512xf32>
    %10 = tpu.matmul %8, %9, %cst_7 {dimension_numbers = #tpu.dot_dimension_numbers<[1], [0], [0], [1], [0, 0, 1, 1], [], []>} : vector<16x512xbf16>, vector<512x512xbf16>, vector<16x512xf32> -> vector<16x512xf32>
    %c0_8 = arith.constant 0 : index
    %c0_9 = arith.constant 0 : index
    %11 = vector.load %arg5[%c0_8, %c0_9] : memref<1x512xf32, #tpu.memory_space<vmem>>, vector<1x512xf32>
    %12 = vector.broadcast %11 : vector<1x512xf32> to vector<16x512xf32>
    %13 = arith.addf %10, %12 : vector<16x512xf32>
    %14 = arith.truncf %13 : vector<16x512xf32> to vector<16x512xbf16>
    %15 = math.tanh %14 : vector<16x512xbf16>
    %c0_10 = arith.constant 0 : index
    %c0_11 = arith.constant 0 : index
    %16 = vector.load %arg6[%c0_10, %c0_11] : memref<512x512xbf16, #tpu.memory_space<vmem>>, vector<512x512xbf16>
    %cst_12 = arith.constant dense<0.000000e+00> : vector<16x512xf32>
    %17 = tpu.matmul %15, %16, %cst_12 {dimension_numbers = #tpu.dot_dimension_numbers<[1], [0], [0], [1], [0, 0, 1, 1], [], []>} : vector<16x512xbf16>, vector<512x512xbf16>, vector<16x512xf32> -> vector<16x512xf32>
    %c0_13 = arith.constant 0 : index
    %c0_14 = arith.constant 0 : index
    %18 = vector.load %arg7[%c0_13, %c0_14] : memref<1x512xf32, #tpu.memory_space<vmem>>, vector<1x512xf32>
    %19 = vector.broadcast %18 : vector<1x512xf32> to vector<16x512xf32>
    %20 = arith.addf %17, %19 : vector<16x512xf32>
    %21 = arith.truncf %20 : vector<16x512xf32> to vector<16x512xbf16>
    %22 = math.tanh %21 : vector<16x512xbf16>
    %c0_15 = arith.constant 0 : index
    %c0_16 = arith.constant 0 : index
    %23 = vector.load %arg8[%c0_15, %c0_16] : memref<512x8xbf16, #tpu.memory_space<vmem>>, vector<512x8xbf16>
    %cst_17 = arith.constant dense<0.000000e+00> : vector<16x8xf32>
    %24 = tpu.matmul %22, %23, %cst_17 {dimension_numbers = #tpu.dot_dimension_numbers<[1], [0], [0], [1], [0, 0, 1, 1], [], []>} : vector<16x512xbf16>, vector<512x8xbf16>, vector<16x8xf32> -> vector<16x8xf32>
    %c0_18 = arith.constant 0 : index
    %c0_19 = arith.constant 0 : index
    %25 = vector.load %arg9[%c0_18, %c0_19] : memref<1x8xf32, #tpu.memory_space<vmem>>, vector<1x8xf32>
    %26 = vector.broadcast %25 : vector<1x8xf32> to vector<16x8xf32>
    %27 = arith.addf %24, %26 : vector<16x8xf32>
    %c0_20 = arith.constant 0 : index
    %c0_21 = arith.constant 0 : index
    %28 = vector.load %arg10[%c0_20, %c0_21] : memref<16x8xf32, #tpu.memory_space<vmem>>, vector<16x8xf32>
    tpu.vector_store %arg10[%c0_20, %c0_21], %27 {strides = array<i32>} : memref<16x8xf32, #tpu.memory_space<vmem>>, vector<16x8xf32>,
    return
  }
  func.func @transform_0(%arg0: i32) -> (i32, i32) {
    %c0_i32 = arith.constant 0 : i32
    %c0_i32_0 = arith.constant 0 : i32
    return %arg0, %c0_i32 : i32, i32
  }
  func.func @transform_1(%arg0: i32) -> (i32, i32) {
    %c0_i32 = arith.constant 0 : i32
    %c0_i32_0 = arith.constant 0 : i32
    %c0_i32_1 = arith.constant 0 : i32
    return %c0_i32, %c0_i32_0 : i32, i32
  }
  func.func @transform_2(%arg0: i32) -> (i32, i32) {
    %c0_i32 = arith.constant 0 : i32
    %c0_i32_0 = arith.constant 0 : i32
    %c0_i32_1 = arith.constant 0 : i32
    return %c0_i32, %c0_i32_0 : i32, i32
  }
  func.func @transform_3(%arg0: i32) -> (i32, i32) {
    %c0_i32 = arith.constant 0 : i32
    %c0_i32_0 = arith.constant 0 : i32
    %c0_i32_1 = arith.constant 0 : i32
    return %c0_i32, %c0_i32_0 : i32, i32
  }
  func.func @transform_4(%arg0: i32) -> (i32, i32) {
    %c0_i32 = arith.constant 0 : i32
    %c0_i32_0 = arith.constant 0 : i32
    %c0_i32_1 = arith.constant 0 : i32
    return %c0_i32, %c0_i32_0 : i32, i32
  }
  func.func @transform_5(%arg0: i32) -> (i32, i32) {
    %c0_i32 = arith.constant 0 : i32
    %c0_i32_0 = arith.constant 0 : i32
    %c0_i32_1 = arith.constant 0 : i32
    return %c0_i32, %c0_i32_0 : i32, i32
  }
  func.func @transform_6(%arg0: i32) -> (i32, i32) {
    %c0_i32 = arith.constant 0 : i32
    %c0_i32_0 = arith.constant 0 : i32
    %c0_i32_1 = arith.constant 0 : i32
    return %c0_i32, %c0_i32_0 : i32, i32
  }
  func.func @transform_7(%arg0: i32) -> (i32, i32) {
    %c0_i32 = arith.constant 0 : i32
    %c0_i32_0 = arith.constant 0 : i32
    %c0_i32_1 = arith.constant 0 : i32
    return %c0_i32, %c0_i32_0 : i32, i32
  }
  func.func @transform_8(%arg0: i32) -> (i32, i32) {
    %c0_i32 = arith.constant 0 : i32
    %c0_i32_0 = arith.constant 0 : i32
    %c0_i32_1 = arith.constant 0 : i32
    return %c0_i32, %c0_i32_0 : i32, i32
  }
  func.func @transform_9(%arg0: i32) -> (i32, i32) {
    %c0_i32 = arith.constant 0 : i32
    %c0_i32_0 = arith.constant 0 : i32
    return %arg0, %c0_i32 : i32, i32
  }
}

</mosaic_0001>

<bundles_post_ra>
// kernel: tpu_custom_call.1
= control target key start
LH: loop header
LB: loop body
LE: loop exit
PB: predicated region body
PF: predicated region fallthrough
CT: control target
= control target key end

     0   :  { %14 = vsyncpa [#allocation3], 0  ;;  %s3669_s0 = inlined_call_operand.vmem [shape: f32[16,32], index: 0, kind: input, shape index: {}]   ;;  %s3670_s1 = inlined_call_operand.vmem [shape: bf16[32,512], index: 1, kind: input, shape index: {}]   ;;  %s3671_s2 = inlined_call_operand.vmem [shape: f32[1,512], index: 2, kind: input, shape index: {}]   ;;  %s3672_s3 = inlined_call_operand.hbm [shape: bf16[512,512], index: 3, kind: input, shape index: {}]   ;;  %s3673_s4 = inlined_call_operand.vmem [shape: f32[1,512], index: 4, kind: input, shape index: {}]   ;;  %s3674_s5 = inlined_call_operand.hbm [shape: bf16[512,512], index: 5, kind: input, shape index: {}]   ;;  %s3675_s6 = inlined_call_operand.vmem [shape: f32[1,512], index: 6, kind: input, shape index: {}]   ;;  %s3676_s7 = inlined_call_operand.vmem [shape: bf16[512,8], index: 7, kind: input, shape index: {}]   ;;  %s3677_s8 = inlined_call_operand.vmem [shape: f32[1,8], index: 8, kind: input, shape index: {}]   ;;  %s3678_s9 = inlined_call_operand.vmem [shape: f32[16,8], index: 9, kind: output, shape index: {}]  }
   0x1   :  { %15 = vsyncpa [#allocation5], 0  ;;  %s3406_s30 = smov [#allocation2]   ;;  %s3358_s13 = scalar_lea.hbm %s3672_s3, 16384 }
   0x2   :  { %s27_s10 = sshll.u32 %s3406_s30, 4  ;;  %p3359_p0 = scmp.ne.s32.totalorder %s3672_s3, %s3358_s13  ;;  %s28_s10 = int_to_ptr.vmem [resolvable:$true] %s27_s10 }
   0x3   :  { %p3362_p1 = scmp.lt.u32.totalorder %s3358_s13, %s3672_s3 }
   0x5   :  { %p3364_p2 = pnand %p3362_p1, %p3359_p0 }
   0x7   :  { %3367 = shalt.err (!%p3364_p2)
}
   0x8   :  { %s3368_s18 = scalar_lea.vmem %s28_s10, 16384  ;;  %p3373_p4 = scmp.lt.s32.totalorder %s28_s10, %s28_s10 }
   0x9   :  { %p3369_p3 = scmp.ne.s32.totalorder %s28_s10, %s3368_s18  ;;  %p3374_p5 = scmp.lt.s32.totalorder %s3368_s18, %s3368_s18 }
   0xb   :  { %p3375_p6 = por %p3374_p5, %p3373_p4 }
   0xd   :  { %p3376_p7 = pnand %p3375_p6, %p3369_p3 }
   0xf   :  { %3379 = shalt.err (!%p3376_p7)
}
  0x10   :  { %s3407_s19 = smov 256   ;;  %s3408_s20 = smov 16  }
  0x11   :  { %33 = dma.hbm_to_vmem [thread:$0]  %s3672_s3, 16384, %s28_s10, [#allocation3], %s3407_s19, %s3407_s19, %s3408_s20  }
  0x12   :  { %s3409_s23 = smov [#allocation4]   ;;  %s3380_s27 = scalar_lea.hbm %s3674_s5, 16384 }
  0x13   :  { %s41_s24 = sshll.u32 %s3409_s23, 4  ;;  %p3381_p8 = scmp.ne.s32.totalorder %s3674_s5, %s3380_s27  ;;  %s42_s24 = int_to_ptr.vmem [resolvable:$true] %s41_s24 }
  0x14   :  { %p3384_p9 = scmp.lt.u32.totalorder %s3380_s27, %s3674_s5 }
  0x16   :  { %p3386_p10 = pnand %p3384_p9, %p3381_p8 }
  0x18   :  { %3389 = shalt.err (!%p3386_p10)
}
  0x19   :  { %s3390_s12 = scalar_lea.vmem %s42_s24, 16384  ;;  %p3395_p12 = scmp.lt.s32.totalorder %s42_s24, %s42_s24 }
  0x1a   :  { %p3391_p11 = scmp.ne.s32.totalorder %s42_s24, %s3390_s12  ;;  %p3396_p13 = scmp.lt.s32.totalorder %s3390_s12, %s3390_s12 }
  0x1c   :  { %p3397_p0 = por %p3396_p13, %p3395_p12 }
  0x1e   :  { %p3398_p1 = pnand %p3397_p0, %p3391_p11 }
  0x20   :  { %3401 = shalt.err (!%p3398_p1)
}
  0x21   :  { %47 = dma.hbm_to_vmem [thread:$0]  %s3674_s5, 16384, %s42_s24, [#allocation5], %s3407_s19, %s3407_s19, %s3408_s20  }
  0x22   :  { %3402 = dma.done.wait [#allocation3], 16384  }
  0x23   :  { %3403 = vsyncadd [#allocation3], 4294950912 }
  0x24   :  { %3404 = dma.done.wait [#allocation5], 16384  }
  0x25   :  { %3405 = vsyncadd [#allocation5], 4294950912  ;;  %v3410_v0 = vmov 0   ;;  %v2906_v1 = vld [vmem:[%s3670_s1 + $0x4] ss:$16 sps:$4 sm:$0xff]   ;;  %v62_v6 = vld [vmem:[%s3669_s0 + $0x8] sm:$0xff] }
  0x26   :  { %170 = vmatprep.mubr.bf16.mxu0 %v3410_v0  ;;  %213 = vmatprep.mubr.bf16.mxu1 %v3410_v0  ;;  %v2908_v2 = vld [vmem:[%s3670_s1] ss:$16 sps:$4 sm:$0xff]   ;;  %v2909_v3 = vld [vmem:[%s3670_s1 + $0x24] ss:$16 sps:$4 sm:$0xff]   ;;  %v2912_v7 = vld [vmem:[%s3670_s1 + $0xc] ss:$16 sps:$4 sm:$0xff]  }
  0x27   :  { %138 = vmatprep.subr.bf16.mxu0 %v2906_v1  ;;  %v2911_v4 = vld [vmem:[%s3670_s1 + $0x20] ss:$16 sps:$4 sm:$0xff]   ;;  %v2914_v8 = vld [vmem:[%s3670_s1 + $0x8] ss:$16 sps:$4 sm:$0xff]   ;;  %v2915_v9 = vld [vmem:[%s3670_s1 + $0x2c] ss:$16 sps:$4 sm:$0xff]   ;;  %181 = vmatprep.subr.bf16.mxu1 %v2912_v7 }
  0x28   :  { %v61_v5 = vld [vmem:[%s3669_s0] sm:$0xff]  ;;  %139 = vmatpush1.bf16.msra.mxu0 %v2908_v2  ;;  %v2917_v10 = vld [vmem:[%s3670_s1 + $0x28] ss:$16 sps:$4 sm:$0xff]   ;;  %vm134_vm0 = vcmask 261120   ;;  %182 = vmatpush1.bf16.msra.mxu1 %v2914_v8  ;;  %v2923_v14 = vld [vmem:[#allocation2 + $0xc] ss:$16 sps:$4 sm:$0xff]  }
  0x29   :  { %140 = vmatprep.subr.bf16.mxu0 %v2909_v3  ;;  %v63_v11 = vpack.c.bf16 %v62_v6, %v61_v5  ;;  %v2918_v12 = vld [vmem:[#allocation2] ss:$16 sps:$4 sm:$0xff]   ;;  %v2920_v13 = vld [vmem:[#allocation2 + $0x4] ss:$16 sps:$4 sm:$0xff]   ;;  %183 = vmatprep.subr.bf16.mxu1 %v2915_v9  ;;  %v2921_v16 = vld [vmem:[#allocation2 + $0x8] ss:$16 sps:$4 sm:$0xff]  }
  0x2a   :  { %v2926_v15 = vld [vmem:[#allocation2 + $0x24] ss:$16 sps:$4 sm:$0xff]   ;;  %v2924_v17 = vld [vmem:[#allocation2 + $0x20] ss:$16 sps:$4 sm:$0xff]   ;;  %v2929_v18 = vld [vmem:[#allocation2 + $0x2c] ss:$16 sps:$4 sm:$0xff]  }
  0x2b   :  { %v2932_v19 = vld [vmem:[#allocation2 + $0x44] ss:$16 sps:$4 sm:$0xff]   ;;  %v2927_v20 = vld [vmem:[#allocation2 + $0x28] ss:$16 sps:$4 sm:$0xff]   ;;  %v2930_v21 = vld [vmem:[#allocation2 + $0x40] ss:$16 sps:$4 sm:$0xff]  }
  0x2c   :  { %141 = vmatpush1.bf16.msra.mxu0 %v2911_v4  ;;  %184 = vmatpush1.bf16.msra.mxu1 %v2917_v10  ;;  %v2935_v22 = vld [vmem:[#allocation2 + $0x4c] ss:$16 sps:$4 sm:$0xff]   ;;  %v2938_v23 = vld [vmem:[#allocation2 + $0x64] ss:$16 sps:$4 sm:$0xff]   ;;  %v2933_v24 = vld [vmem:[#allocation2 + $0x48] ss:$16 sps:$4 sm:$0xff]  }
  0x2d   :  { %1022 = vmatprep.subr.bf16.mxu0 %v2920_v13  ;;  %1108 = vmatprep.subr.bf16.mxu1 %v2923_v14  ;;  %v2936_v25 = vld [vmem:[#allocation2 + $0x60] ss:$16 sps:$4 sm:$0xff]   ;;  %v2941_v26 = vld [vmem:[#allocation2 + $0x6c] ss:$16 sps:$4 sm:$0xff]   ;;  %v2944_v27 = vld [vmem:[#allocation2 + $0x84] ss:$16 sps:$4 sm:$0xff]   ;;  %v74_v14 = vlaneseq }
  0x2e   :  { %v2939_v28 = vld [vmem:[#allocation2 + $0x68] ss:$16 sps:$4 sm:$0xff]   ;;  %v2942_v29 = vld [vmem:[#allocation2 + $0x80] ss:$16 sps:$4 sm:$0xff]   ;;  %v2947_v30 = vld [vmem:[#allocation2 + $0x8c] ss:$16 sps:$4 sm:$0xff]  }
  0x2f   :  { %2534 = vmatmul.mubr.msk.bf16.vlgmr.msra.gmra.mrb[0].mxu0 %vm134_vm0, %v63_v11  ;;  %2535 = vmatmul.mubr.msk.bf16.vlgmr.msra.gmra.mrb[0].mxu1 %vm134_vm0, %v63_v11  ;;  %v2950_v31 = vld [vmem:[#allocation2 + $0xa4] ss:$16 sps:$4 sm:$0xff]   ;;  %v2945_v32 = vld [vmem:[#allocation2 + $0x88] ss:$16 sps:$4 sm:$0xff]   ;;  %v2948_v33 = vld [vmem:[#allocation2 + $0xa0] ss:$16 sps:$4 sm:$0xff]  }
  0x30   :  { %1023 = vmatpush1.bf16.msra.mxu0 %v2918_v12  ;;  %1109 = vmatpush1.bf16.msra.mxu1 %v2921_v16  ;;  %v2953_v34 = vld [vmem:[#allocation2 + $0xac] ss:$16 sps:$4 sm:$0xff]   ;;  %v2956_v35 = vld [vmem:[#allocation2 + $0xc4] ss:$16 sps:$4 sm:$0xff]   ;;  %v2951_v36 = vld [vmem:[#allocation2 + $0xa8] ss:$16 sps:$4 sm:$0xff]  }
  0x31   :  { %1024 = vmatprep.subr.bf16.mxu0 %v2926_v15  ;;  %1110 = vmatprep.subr.bf16.mxu1 %v2929_v18  ;;  %v2954_v37 = vld [vmem:[#allocation2 + $0xc0] ss:$16 sps:$4 sm:$0xff]   ;;  %v2959_v38 = vld [vmem:[#allocation2 + $0xcc] ss:$16 sps:$4 sm:$0xff]   ;;  %v2962_v39 = vld [vmem:[#allocation2 + $0xe4] ss:$16 sps:$4 sm:$0xff]  }
  0x32   :  { %v2957_v40 = vld [vmem:[#allocation2 + $0xc8] ss:$16 sps:$4 sm:$0xff]   ;;  %v2960_v41 = vld [vmem:[#allocation2 + $0xe0] ss:$16 sps:$4 sm:$0xff]   ;;  %v2965_v42 = vld [vmem:[#allocation2 + $0xec] ss:$16 sps:$4 sm:$0xff]  }
  0x33   :  { %v2968_v43 = vld [vmem:[#allocation2 + $0x104] ss:$16 sps:$4 sm:$0xff]   ;;  %v2963_v44 = vld [vmem:[#allocation2 + $0xe8] ss:$16 sps:$4 sm:$0xff]   ;;  %v2966_v45 = vld [vmem:[#allocation2 + $0x100] ss:$16 sps:$4 sm:$0xff]  }
  0x34   :  { %1025 = vmatpush1.bf16.msra.mxu0 %v2924_v17  ;;  %1111 = vmatpush1.bf16.msra.mxu1 %v2927_v20  ;;  %v2971_v46 = vld [vmem:[#allocation2 + $0x10c] ss:$16 sps:$4 sm:$0xff]   ;;  %v2974_v47 = vld [vmem:[#allocation2 + $0x124] ss:$16 sps:$4 sm:$0xff]   ;;  %v2969_v48 = vld [vmem:[#allocation2 + $0x108] ss:$16 sps:$4 sm:$0xff]  }
  0x35   :  { %1026 = vmatprep.subr.bf16.mxu0 %v2932_v19  ;;  %1112 = vmatprep.subr.bf16.mxu1 %v2935_v22  ;;  %v2972_v49 = vld [vmem:[#allocation2 + $0x120] ss:$16 sps:$4 sm:$0xff]   ;;  %v2977_v50 = vld [vmem:[#allocation2 + $0x12c] ss:$16 sps:$4 sm:$0xff]   ;;  %v2980_v51 = vld [vmem:[#allocation2 + $0x144] ss:$16 sps:$4 sm:$0xff]  }
  0x36   :  { %v2975_v52 = vld [vmem:[#allocation2 + $0x128] ss:$16 sps:$4 sm:$0xff]   ;;  %v2978_v53 = vld [vmem:[#allocation2 + $0x140] ss:$16 sps:$4 sm:$0xff]   ;;  %v2983_v54 = vld [vmem:[#allocation2 + $0x14c] ss:$16 sps:$4 sm:$0xff]  }
  0x37   :  { %v2981_v55 = vld [vmem:[#allocation2 + $0x148] ss:$16 sps:$4 sm:$0xff]   ;;  %v2986_v56 = vld [vmem:[#allocation2 + $0x164] ss:$16 sps:$4 sm:$0xff]   ;;  %v2989_v57 = vld [vmem:[#allocation2 + $0x16c] ss:$16 sps:$4 sm:$0xff]  }
  0x38   :  { %1027 = vmatpush1.bf16.msra.mxu0 %v2930_v21  ;;  %1113 = vmatpush1.bf16.msra.mxu1 %v2933_v24  ;;  %v2984_v58 = vld [vmem:[#allocation2 + $0x160] ss:$16 sps:$4 sm:$0xff]   ;;  %v2987_v59 = vld [vmem:[#allocation2 + $0x168] ss:$16 sps:$4 sm:$0xff]   ;;  %v2992_v60 = vld [vmem:[#allocation2 + $0x184] ss:$16 sps:$4 sm:$0xff]  }
  0x39   :  { %1028 = vmatprep.subr.bf16.mxu0 %v2938_v23  ;;  %1114 = vmatprep.subr.bf16.mxu1 %v2941_v26  ;;  %v2995_v61 = vld [vmem:[#allocation2 + $0x18c] ss:$16 sps:$4 sm:$0xff]   ;;  %v2990_v62 = vld [vmem:[#allocation2 + $0x180] ss:$16 sps:$4 sm:$0xff]   ;;  %v2993_v63 = vld [vmem:[#allocation2 + $0x188] ss:$16 sps:$4 sm:$0xff]  }
  0x3a   :  { %v2998_v0 = vld [vmem:[#allocation2 + $0x1a4] ss:$16 sps:$4 sm:$0xff]   ;;  %v3001_v1 = vld [vmem:[#allocation2 + $0x1ac] ss:$16 sps:$4 sm:$0xff]   ;;  %v2996_v2 = vld [vmem:[#allocation2 + $0x1a0] ss:$16 sps:$4 sm:$0xff]  }
  0x3b   :  { %v2999_v3 = vld [vmem:[#allocation2 + $0x1a8] ss:$16 sps:$4 sm:$0xff]   ;;  %v3004_v4 = vld [vmem:[#allocation2 + $0x1c4] ss:$16 sps:$4 sm:$0xff]   ;;  %v3002_v5 = vld [vmem:[#allocation2 + $0x1c0] ss:$16 sps:$4 sm:$0xff]  }
  0x3c   :  { %1029 = vmatpush1.bf16.msra.mxu0 %v2936_v25  ;;  %1115 = vmatpush1.bf16.msra.mxu1 %v2939_v28  ;;  %v3005_v6 = vld [vmem:[#allocation2 + $0x1c8] ss:$16 sps:$4 sm:$0xff]   ;;  %v3007_v7 = vld [vmem:[#allocation2 + $0x1cc] ss:$16 sps:$4 sm:$0xff]   ;;  %v3010_v8 = vld [vmem:[#allocation2 + $0x1e4] ss:$16 sps:$4 sm:$0xff]  }
  0x3d   :  { %1030 = vmatprep.subr.bf16.mxu0 %v2944_v27  ;;  %1116 = vmatprep.subr.bf16.mxu1 %v2947_v30  ;;  %v3013_v9 = vld [vmem:[#allocation2 + $0x1ec] ss:$16 sps:$4 sm:$0xff]   ;;  %v3008_v10 = vld [vmem:[#allocation2 + $0x1e0] ss:$16 sps:$4 sm:$0xff]   ;;  %v3011_v11 = vld [vmem:[#allocation2 + $0x1e8] ss:$16 sps:$4 sm:$0xff]  }
  0x3e   :  { %v3016_v12 = vld [vmem:[#allocation2 + $0x204] ss:$16 sps:$4 sm:$0xff]   ;;  %v3019_v13 = vld [vmem:[#allocation2 + $0x20c] ss:$16 sps:$4 sm:$0xff]   ;;  %v75_v15 = vshrl.u32 %v74_v14, 7  ;;  %vm2517_vm1 = vcmask 64512  }
  0x3f   :  { %v72_v17 = vld [vmem:[%s3671_s2] sm:$0xf]  ;;  %v3064_v14 = vld [vmem:[#allocation2 + $0x304] ss:$16 sps:$4 sm:$0xff]  }
  0x40   :  { %1031 = vmatpush1.bf16.msra.mxu0 %v2942_v29  ;;  %1117 = vmatpush1.bf16.msra.mxu1 %v2945_v32  ;;  %v3517_v16 = vsub.s32 0, %v75_v15  ;;  %v3522_v18 = vsub.s32 1, %v75_v15  ;;  %v3524_v19 = vsub.s32 2, %v75_v15  ;;  %v3526_v20 = vsub.s32 3, %v75_v15  ;;  %v3067_v15 = vld [vmem:[#allocation2 + $0x30c] ss:$16 sps:$4 sm:$0xff]  }
  0x41   :  { %1032 = vmatprep.subr.bf16.mxu0 %v2950_v31  ;;  %1118 = vmatprep.subr.bf16.mxu1 %v2953_v34 }
  0x42   :  { %v77_v21 = vrot.slane %v72_v17, %v3517_v16  ;;  %v81_v23 = vrot.slane %v72_v17, %v3522_v18  ;;  %v85_v25 = vrot.slane %v72_v17, %v3524_v19  ;;  %v89_v27 = vrot.slane %v72_v17, %v3526_v20  ;;  %v3062_v17 = vld [vmem:[#allocation2 + $0x300] ss:$16 sps:$4 sm:$0xff]  }
  0x44   :  { %1033 = vmatpush1.bf16.msra.mxu0 %v2948_v33  ;;  %1119 = vmatpush1.bf16.msra.mxu1 %v2951_v36 }
  0x45   :  { %1034 = vmatprep.subr.bf16.mxu0 %v2956_v35  ;;  %1120 = vmatprep.subr.bf16.mxu1 %v2959_v38 }
  0x48   :  { %1035 = vmatpush1.bf16.msra.mxu0 %v2954_v37  ;;  %1121 = vmatpush1.bf16.msra.mxu1 %v2957_v40 }
  0x49   :  { %1036 = vmatprep.subr.bf16.mxu0 %v2962_v39  ;;  %1122 = vmatprep.subr.bf16.mxu1 %v2965_v42 }
  0x4c   :  { %1037 = vmatpush1.bf16.msra.mxu0 %v2960_v41  ;;  %1123 = vmatpush1.bf16.msra.mxu1 %v2963_v44 }
  0x4d   :  { %1038 = vmatprep.subr.bf16.mxu0 %v2968_v43  ;;  %1124 = vmatprep.subr.bf16.mxu1 %v2971_v46  ;;  %v3017_v46 = vld [vmem:[#allocation2 + $0x208] ss:$16 sps:$4 sm:$0xff]  }
  0x50   :  { %1039 = vmatpush1.bf16.msra.mxu0 %v2966_v45  ;;  %1125 = vmatpush1.bf16.msra.mxu1 %v2969_v48  ;;  %v3014_v45 = vld [vmem:[#allocation2 + $0x200] ss:$16 sps:$4 sm:$0xff]   ;;  %v3022_v48 = vld [vmem:[#allocation2 + $0x224] ss:$16 sps:$4 sm:$0xff]  }
  0x51   :  { %1040 = vmatprep.subr.bf16.mxu0 %v2974_v47  ;;  %1126 = vmatprep.subr.bf16.mxu1 %v2977_v50 }
  0x54   :  { %1041 = vmatpush1.bf16.msra.mxu0 %v2972_v49  ;;  %1127 = vmatpush1.bf16.msra.mxu1 %v2975_v52  ;;  %v3025_v49 = vld [vmem:[#allocation2 + $0x22c] ss:$16 sps:$4 sm:$0xff]   ;;  %v3023_v52 = vld [vmem:[#allocation2 + $0x228] ss:$16 sps:$4 sm:$0xff]  }
  0x55   :  { %1042 = vmatprep.subr.bf16.mxu0 %v2980_v51  ;;  %1128 = vmatprep.subr.bf16.mxu1 %v2983_v54  ;;  %v3020_v51 = vld [vmem:[#allocation2 + $0x220] ss:$16 sps:$4 sm:$0xff]   ;;  %v3028_v54 = vld [vmem:[#allocation2 + $0x244] ss:$16 sps:$4 sm:$0xff]  }
  0x58   :  { %1043 = vmatpush1.bf16.msra.mxu0 %v2978_v53  ;;  %1129 = vmatpush1.bf16.msra.mxu1 %v2981_v55  ;;  %v3031_v55 = vld [vmem:[#allocation2 + $0x24c] ss:$16 sps:$4 sm:$0xff]  }
  0x59   :  { %1044 = vmatprep.subr.bf16.mxu0 %v2986_v56  ;;  %1130 = vmatprep.subr.bf16.mxu1 %v2989_v57  ;;  %v3026_v56 = vld [vmem:[#allocation2 + $0x240] ss:$16 sps:$4 sm:$0xff]   ;;  %v3029_v57 = vld [vmem:[#allocation2 + $0x248] ss:$16 sps:$4 sm:$0xff]  }
  0x5c   :  { %1045 = vmatpush1.bf16.msra.mxu0 %v2984_v58  ;;  %1131 = vmatpush1.bf16.msra.mxu1 %v2987_v59  ;;  %v3034_v58 = vld [vmem:[#allocation2 + $0x264] ss:$16 sps:$4 sm:$0xff]   ;;  %v3037_v59 = vld [vmem:[#allocation2 + $0x26c] ss:$16 sps:$4 sm:$0xff]  }
  0x5d   :  { %1046 = vmatprep.subr.bf16.mxu0 %v2992_v60  ;;  %1132 = vmatprep.subr.bf16.mxu1 %v2995_v61  ;;  %v3032_v60 = vld [vmem:[#allocation2 + $0x260] ss:$16 sps:$4 sm:$0xff]   ;;  %v3035_v61 = vld [vmem:[#allocation2 + $0x268] ss:$16 sps:$4 sm:$0xff]  }
  0x60   :  { %1047 = vmatpush1.bf16.msra.mxu0 %v2990_v62  ;;  %1133 = vmatpush1.bf16.msra.mxu1 %v2993_v63  ;;  %v3040_v62 = vld [vmem:[#allocation2 + $0x284] ss:$16 sps:$4 sm:$0xff]   ;;  %v3043_v63 = vld [vmem:[#allocation2 + $0x28c] ss:$16 sps:$4 sm:$0xff]  }
  0x61   :  { %1048 = vmatprep.subr.bf16.mxu0 %v2998_v0  ;;  %1134 = vmatprep.subr.bf16.mxu1 %v3001_v1  ;;  %v3038_v0 = vld [vmem:[#allocation2 + $0x280] ss:$16 sps:$4 sm:$0xff]   ;;  %v3041_v1 = vld [vmem:[#allocation2 + $0x288] ss:$16 sps:$4 sm:$0xff]  }
  0x64   :  { %1049 = vmatpush1.bf16.msra.mxu0 %v2996_v2  ;;  %1135 = vmatpush1.bf16.msra.mxu1 %v2999_v3  ;;  %v3046_v2 = vld [vmem:[#allocation2 + $0x2a4] ss:$16 sps:$4 sm:$0xff]   ;;  %v3049_v3 = vld [vmem:[#allocation2 + $0x2ac] ss:$16 sps:$4 sm:$0xff]  }
  0x65   :  { %1050 = vmatprep.subr.bf16.mxu0 %v3004_v4  ;;  %1136 = vmatprep.subr.bf16.mxu1 %v3007_v7  ;;  %v3044_v4 = vld [vmem:[#allocation2 + $0x2a0] ss:$16 sps:$4 sm:$0xff]   ;;  %v3055_v7 = vld [vmem:[#allocation2 + $0x2cc] ss:$16 sps:$4 sm:$0xff]  }
  0x68   :  { %1051 = vmatpush1.bf16.msra.mxu0 %v3002_v5  ;;  %1137 = vmatpush1.bf16.msra.mxu1 %v3005_v6  ;;  %v3047_v5 = vld [vmem:[#allocation2 + $0x2a8] ss:$16 sps:$4 sm:$0xff]   ;;  %v3052_v6 = vld [vmem:[#allocation2 + $0x2c4] ss:$16 sps:$4 sm:$0xff]  }
  0x69   :  { %1052 = vmatprep.subr.bf16.mxu0 %v3010_v8  ;;  %1138 = vmatprep.subr.bf16.mxu1 %v3013_v9  ;;  %v3050_v8 = vld [vmem:[#allocation2 + $0x2c0] ss:$16 sps:$4 sm:$0xff]   ;;  %v3053_v9 = vld [vmem:[#allocation2 + $0x2c8] ss:$16 sps:$4 sm:$0xff]  }
  0x6c   :  { %1053 = vmatpush1.bf16.msra.mxu0 %v3008_v10  ;;  %1139 = vmatpush1.bf16.msra.mxu1 %v3011_v11  ;;  %v3058_v10 = vld [vmem:[#allocation2 + $0x2e4] ss:$16 sps:$4 sm:$0xff]   ;;  %v3061_v11 = vld [vmem:[#allocation2 + $0x2ec] ss:$16 sps:$4 sm:$0xff]  }
  0x6d   :  { %1065 = vmatprep.subr.bf16.mxu0 %v3016_v12  ;;  %1151 = vmatprep.subr.bf16.mxu1 %v3019_v13  ;;  %v3056_v12 = vld [vmem:[#allocation2 + $0x2e0] ss:$16 sps:$4 sm:$0xff]   ;;  %v3059_v13 = vld [vmem:[#allocation2 + $0x2e8] ss:$16 sps:$4 sm:$0xff]  }
 0x102   :  { %v172_v22 = vpop.f32.mrb[0].mxu0  ;;  %v215_v33 = vpop.f32.mrb[0].mxu1 }
 0x103   :  { %v174_v24 = vpop.f32.mrb[1].mxu0  ;;  %v173_v28 = vadd.f32 %v172_v22, %v77_v21  ;;  %v3532_v35 = vadd.f32 %v215_v33, %v85_v25  ;;  %v217_v36 = vpop.f32.mrb[1].mxu1  ;;  %v3070_v22 = vld [vmem:[#allocation2 + $0x324] ss:$16 sps:$4 sm:$0xff]   ;;  %v3083_v33 = vld [vmem:[#allocation2 + $0x368] ss:$16 sps:$4 sm:$0xff]  }
 0x104   :  { %v176_v26 = vpop.f32.mrb[2].mxu0  ;;  %v175_v31 = vadd.f32 %v174_v24, %v81_v23  ;;  %v218_v38 = vadd.f32 %v217_v36, %v89_v27  ;;  %v219_v39 = vpop.f32.mrb[2].mxu1  ;;  %v3068_v24 = vld [vmem:[#allocation2 + $0x320] ss:$16 sps:$4 sm:$0xff]   ;;  %v3091_v36 = vld [vmem:[#allocation2 + $0x38c] ss:$16 sps:$4 sm:$0xff]  }
 0x105   :  { %v177_v29 = vadd.f32 %v176_v26, %v77_v21  ;;  %v178_v30 = vpop.f32.mrb[3].mxu0  ;;  %v3534_v40 = vadd.f32 %v219_v39, %v85_v25  ;;  %v221_v41 = vpop.f32.mrb[3].mxu1  ;;  %v3065_v21 = vld [vmem:[#allocation2 + $0x308] ss:$16 sps:$4 sm:$0xff]   ;;  %v3076_v26 = vld [vmem:[#allocation2 + $0x344] ss:$16 sps:$4 sm:$0xff]  }
 0x106   :  { %v179_v32 = vadd.f32 %v178_v30, %v81_v23  ;;  %v222_v42 = vadd.f32 %v221_v41, %v89_v27  ;;  %v3073_v23 = vld [vmem:[#allocation2 + $0x32c] ss:$16 sps:$4 sm:$0xff]   ;;  %v3071_v25 = vld [vmem:[#allocation2 + $0x328] ss:$16 sps:$4 sm:$0xff]   ;;  %v3082_v30 = vld [vmem:[#allocation2 + $0x364] ss:$16 sps:$4 sm:$0xff]  }
 0x107   :  { %v224_v34 = vpack.c.bf16 %v177_v29, %v173_v28  ;;  %v226_v43 = vpack.c.bf16 %v3534_v40, %v3532_v35  ;;  %v3079_v27 = vld [vmem:[#allocation2 + $0x34c] ss:$16 sps:$4 sm:$0xff]   ;;  %v3074_v28 = vld [vmem:[#allocation2 + $0x340] ss:$16 sps:$4 sm:$0xff]   ;;  %v3077_v29 = vld [vmem:[#allocation2 + $0x348] ss:$16 sps:$4 sm:$0xff]  }
 0x108   :  { %v225_v37 = vpack.c.bf16 %v179_v32, %v175_v31  ;;  %v227_v44 = vpack.c.bf16 %v222_v42, %v218_v38  ;;  %v3085_v31 = vld [vmem:[#allocation2 + $0x36c] ss:$16 sps:$4 sm:$0xff]   ;;  %v3080_v32 = vld [vmem:[#allocation2 + $0x360] ss:$16 sps:$4 sm:$0xff]   ;;  %v3089_v38 = vld [vmem:[#allocation2 + $0x388] ss:$16 sps:$4 sm:$0xff]  }
 0x109   :  { %v3094_v39 = vld [vmem:[#allocation2 + $0x3a4] ss:$16 sps:$4 sm:$0xff]   ;;  %v3097_v41 = vld [vmem:[#allocation2 + $0x3ac] ss:$16 sps:$4 sm:$0xff]   ;;  %v3092_v42 = vld [vmem:[#allocation2 + $0x3a0] ss:$16 sps:$4 sm:$0xff]  }
 0x10a   :  { %3334 = vtanh.bf16 %v225_v37  ;;  %v3086_v37 = vld [vmem:[#allocation2 + $0x380] ss:$16 sps:$4 sm:$0xff]   ;;  %v3113_v40 = vld [vmem:[#allocation4 + $0x8] ss:$16 sps:$4 sm:$0xff]  }
 0x10b   :  { %3336 = vtanh.bf16 %v224_v34  ;;  %v3088_v34 = vld [vmem:[#allocation2 + $0x384] ss:$16 sps:$4 sm:$0xff]   ;;  %v3110_v35 = vld [vmem:[#allocation4] ss:$16 sps:$4 sm:$0xff]  }
 0x10c   :  { %3338 = vtanh.bf16 %v227_v44  ;;  %v3095_v44 = vld [vmem:[#allocation2 + $0x3a8] ss:$16 sps:$4 sm:$0xff]  }
 0x10d   :  { %3340 = vtanh.bf16 %v226_v43  ;;  %v3118_v43 = vld [vmem:[#allocation4 + $0x24] ss:$16 sps:$4 sm:$0xff]  }
 0x115   :  { %v3335_v47 = vpop.eup %3334 }
 0x116   :  { %v3337_v50 = vpop.eup %3336  ;;  %1054 = vmatprep.mubr.bf16.mxu0 %v3335_v47  ;;  %1140 = vmatprep.mubr.bf16.mxu1 %v3335_v47  ;;  %v3098_v47 = vld [vmem:[#allocation2 + $0x3c0] ss:$16 sps:$4 sm:$0xff]  }
 0x117   :  { %1055 = vmatmul.mubr.bf16.vlgmr.msra.gmra.mrb[4].mxu0 %v3337_v50  ;;  %1141 = vmatmul.mubr.bf16.vlgmr.msra.gmra.mrb[4].mxu1 %v3337_v50  ;;  %v3339_v53 = vpop.eup %3338  ;;  %v3109_v50 = vld [vmem:[#allocation2 + $0x3ec] ss:$16 sps:$4 sm:$0xff]  }
 0x118   :  { %1066 = vmatpush1.bf16.msra.mxu0 %v3014_v45  ;;  %1152 = vmatpush1.bf16.msra.mxu1 %v3017_v46  ;;  %v3100_v45 = vld [vmem:[#allocation2 + $0x3c4] ss:$16 sps:$4 sm:$0xff]   ;;  %v3103_v46 = vld [vmem:[#allocation2 + $0x3cc] ss:$16 sps:$4 sm:$0xff]  }
 0x119   :  { %1067 = vmatprep.subr.bf16.mxu0 %v3022_v48  ;;  %1153 = vmatprep.subr.bf16.mxu1 %v3025_v49  ;;  %v3101_v48 = vld [vmem:[#allocation2 + $0x3c8] ss:$16 sps:$4 sm:$0xff]   ;;  %v3106_v49 = vld [vmem:[#allocation2 + $0x3e4] ss:$16 sps:$4 sm:$0xff]  }
 0x11a   :  { %1097 = vmatprep.mubr.bf16.mxu0 %v3339_v53  ;;  %1183 = vmatprep.mubr.bf16.mxu1 %v3339_v53  ;;  %v3112_v53 = vld [vmem:[#allocation4 + $0x4] ss:$16 sps:$4 sm:$0xff]  }
 0x11c   :  { %1068 = vmatpush1.bf16.msra.mxu0 %v3020_v51  ;;  %1154 = vmatpush1.bf16.msra.mxu1 %v3023_v52  ;;  %v3104_v51 = vld [vmem:[#allocation2 + $0x3e0] ss:$16 sps:$4 sm:$0xff]   ;;  %v3107_v52 = vld [vmem:[#allocation2 + $0x3e8] ss:$16 sps:$4 sm:$0xff]  }
 0x11d   :  { %1069 = vmatprep.subr.bf16.mxu0 %v3028_v54  ;;  %1155 = vmatprep.subr.bf16.mxu1 %v3031_v55  ;;  %v3115_v54 = vld [vmem:[#allocation4 + $0xc] ss:$16 sps:$4 sm:$0xff]  }
 0x11e   :  { %v3121_v55 = vld [vmem:[#allocation4 + $0x2c] ss:$16 sps:$4 sm:$0xff]  }
 0x120   :  { %1070 = vmatpush1.bf16.msra.mxu0 %v3026_v56  ;;  %1156 = vmatpush1.bf16.msra.mxu1 %v3029_v57  ;;  %v3341_v56 = vpop.eup %3340  ;;  %v3116_v57 = vld [vmem:[#allocation4 + $0x20] ss:$16 sps:$4 sm:$0xff]  }
 0x121   :  { %1071 = vmatprep.subr.bf16.mxu0 %v3034_v58  ;;  %1157 = vmatprep.subr.bf16.mxu1 %v3037_v59  ;;  %v3119_v58 = vld [vmem:[#allocation4 + $0x28] ss:$16 sps:$4 sm:$0xff]   ;;  %v3124_v59 = vld [vmem:[#allocation4 + $0x44] ss:$16 sps:$4 sm:$0xff]  }
 0x124   :  { %1072 = vmatpush1.bf16.msra.mxu0 %v3032_v60  ;;  %1158 = vmatpush1.bf16.msra.mxu1 %v3035_v61  ;;  %v3127_v60 = vld [vmem:[#allocation4 + $0x4c] ss:$16 sps:$4 sm:$0xff]   ;;  %v3122_v61 = vld [vmem:[#allocation4 + $0x40] ss:$16 sps:$4 sm:$0xff]  }
 0x125   :  { %1073 = vmatprep.subr.bf16.mxu0 %v3040_v62  ;;  %1159 = vmatprep.subr.bf16.mxu1 %v3043_v63  ;;  %v3125_v62 = vld [vmem:[#allocation4 + $0x48] ss:$16 sps:$4 sm:$0xff]   ;;  %v3130_v63 = vld [vmem:[#allocation4 + $0x64] ss:$16 sps:$4 sm:$0xff]  }
 0x128   :  { %1074 = vmatpush1.bf16.msra.mxu0 %v3038_v0  ;;  %1160 = vmatpush1.bf16.msra.mxu1 %v3041_v1  ;;  %v3133_v0 = vld [vmem:[#allocation4 + $0x6c] ss:$16 sps:$4 sm:$0xff]   ;;  %v3128_v1 = vld [vmem:[#allocation4 + $0x60] ss:$16 sps:$4 sm:$0xff]  }
 0x129   :  { %1075 = vmatprep.subr.bf16.mxu0 %v3046_v2  ;;  %1161 = vmatprep.subr.bf16.mxu1 %v3049_v3  ;;  %v3131_v2 = vld [vmem:[#allocation4 + $0x68] ss:$16 sps:$4 sm:$0xff]   ;;  %v3136_v3 = vld [vmem:[#allocation4 + $0x84] ss:$16 sps:$4 sm:$0xff]  }
 0x12c   :  { %1076 = vmatpush1.bf16.msra.mxu0 %v3044_v4  ;;  %1162 = vmatpush1.bf16.msra.mxu1 %v3047_v5  ;;  %v3139_v4 = vld [vmem:[#allocation4 + $0x8c] ss:$16 sps:$4 sm:$0xff]   ;;  %v3134_v5 = vld [vmem:[#allocation4 + $0x80] ss:$16 sps:$4 sm:$0xff]  }
 0x12d   :  { %1077 = vmatprep.subr.bf16.mxu0 %v3052_v6  ;;  %1163 = vmatprep.subr.bf16.mxu1 %v3055_v7  ;;  %v3137_v6 = vld [vmem:[#allocation4 + $0x88] ss:$16 sps:$4 sm:$0xff]   ;;  %v3142_v7 = vld [vmem:[#allocation4 + $0xa4] ss:$16 sps:$4 sm:$0xff]  }
 0x130   :  { %1078 = vmatpush1.bf16.msra.mxu0 %v3050_v8  ;;  %1164 = vmatpush1.bf16.msra.mxu1 %v3053_v9  ;;  %v3145_v8 = vld [vmem:[#allocation4 + $0xac] ss:$16 sps:$4 sm:$0xff]   ;;  %v3140_v9 = vld [vmem:[#allocation4 + $0xa0] ss:$16 sps:$4 sm:$0xff]  }
 0x131   :  { %1079 = vmatprep.subr.bf16.mxu0 %v3058_v10  ;;  %1165 = vmatprep.subr.bf16.mxu1 %v3061_v11  ;;  %v3143_v10 = vld [vmem:[#allocation4 + $0xa8] ss:$16 sps:$4 sm:$0xff]   ;;  %v3148_v11 = vld [vmem:[#allocation4 + $0xc4] ss:$16 sps:$4 sm:$0xff]  }
 0x134   :  { %1080 = vmatpush1.bf16.msra.mxu0 %v3056_v12  ;;  %1166 = vmatpush1.bf16.msra.mxu1 %v3059_v13  ;;  %v3151_v12 = vld [vmem:[#allocation4 + $0xcc] ss:$16 sps:$4 sm:$0xff]   ;;  %v3146_v13 = vld [vmem:[#allocation4 + $0xc0] ss:$16 sps:$4 sm:$0xff]  }
 0x135   :  { %1081 = vmatprep.subr.bf16.mxu0 %v3064_v14  ;;  %1167 = vmatprep.subr.bf16.mxu1 %v3067_v15  ;;  %v3149_v14 = vld [vmem:[#allocation4 + $0xc8] ss:$16 sps:$4 sm:$0xff]   ;;  %v3154_v15 = vld [vmem:[#allocation4 + $0xe4] ss:$16 sps:$4 sm:$0xff]  }
 0x138   :  { %1082 = vmatpush1.bf16.msra.mxu0 %v3062_v17  ;;  %1168 = vmatpush1.bf16.msra.mxu1 %v3065_v21  ;;  %v3157_v17 = vld [vmem:[#allocation4 + $0xec] ss:$16 sps:$4 sm:$0xff]   ;;  %v3152_v21 = vld [vmem:[#allocation4 + $0xe0] ss:$16 sps:$4 sm:$0xff]  }
 0x139   :  { %1083 = vmatprep.subr.bf16.mxu0 %v3070_v22  ;;  %1169 = vmatprep.subr.bf16.mxu1 %v3073_v23  ;;  %v3155_v22 = vld [vmem:[#allocation4 + $0xe8] ss:$16 sps:$4 sm:$0xff]   ;;  %v3160_v23 = vld [vmem:[#allocation4 + $0x104] ss:$16 sps:$4 sm:$0xff]  }
 0x13c   :  { %1084 = vmatpush1.bf16.msra.mxu0 %v3068_v24  ;;  %1170 = vmatpush1.bf16.msra.mxu1 %v3071_v25  ;;  %v3163_v24 = vld [vmem:[#allocation4 + $0x10c] ss:$16 sps:$4 sm:$0xff]   ;;  %v3158_v25 = vld [vmem:[#allocation4 + $0x100] ss:$16 sps:$4 sm:$0xff]  }
 0x13d   :  { %1085 = vmatprep.subr.bf16.mxu0 %v3076_v26  ;;  %1171 = vmatprep.subr.bf16.mxu1 %v3079_v27  ;;  %v3161_v26 = vld [vmem:[#allocation4 + $0x108] ss:$16 sps:$4 sm:$0xff]   ;;  %v3166_v27 = vld [vmem:[#allocation4 + $0x124] ss:$16 sps:$4 sm:$0xff]  }
 0x140   :  { %1086 = vmatpush1.bf16.msra.mxu0 %v3074_v28  ;;  %1172 = vmatpush1.bf16.msra.mxu1 %v3077_v29  ;;  %v3169_v28 = vld [vmem:[#allocation4 + $0x12c] ss:$16 sps:$4 sm:$0xff]   ;;  %v3164_v29 = vld [vmem:[#allocation4 + $0x120] ss:$16 sps:$4 sm:$0xff]  }
 0x141   :  { %1087 = vmatprep.subr.bf16.mxu0 %v3082_v30  ;;  %1173 = vmatprep.subr.bf16.mxu1 %v3085_v31  ;;  %v3167_v30 = vld [vmem:[#allocation4 + $0x128] ss:$16 sps:$4 sm:$0xff]   ;;  %v3172_v31 = vld [vmem:[#allocation4 + $0x144] ss:$16 sps:$4 sm:$0xff]  }
 0x144   :  { %1088 = vmatpush1.bf16.msra.mxu0 %v3080_v32  ;;  %1174 = vmatpush1.bf16.msra.mxu1 %v3083_v33  ;;  %v3175_v32 = vld [vmem:[#allocation4 + $0x14c] ss:$16 sps:$4 sm:$0xff]   ;;  %v3170_v33 = vld [vmem:[#allocation4 + $0x140] ss:$16 sps:$4 sm:$0xff]  }
 0x145   :  { %1089 = vmatprep.subr.bf16.mxu0 %v3088_v34  ;;  %1175 = vmatprep.subr.bf16.mxu1 %v3091_v36  ;;  %v3173_v34 = vld [vmem:[#allocation4 + $0x148] ss:$16 sps:$4 sm:$0xff]   ;;  %v3178_v36 = vld [vmem:[#allocation4 + $0x164] ss:$16 sps:$4 sm:$0xff]  }
 0x148   :  { %1090 = vmatpush1.bf16.msra.mxu0 %v3086_v37  ;;  %1176 = vmatpush1.bf16.msra.mxu1 %v3089_v38  ;;  %v3181_v37 = vld [vmem:[#allocation4 + $0x16c] ss:$16 sps:$4 sm:$0xff]   ;;  %v3176_v38 = vld [vmem:[#allocation4 + $0x160] ss:$16 sps:$4 sm:$0xff]  }
 0x149   :  { %1091 = vmatprep.subr.bf16.mxu0 %v3094_v39  ;;  %1177 = vmatprep.subr.bf16.mxu1 %v3097_v41  ;;  %v3179_v39 = vld [vmem:[#allocation4 + $0x168] ss:$16 sps:$4 sm:$0xff]   ;;  %v3184_v41 = vld [vmem:[#allocation4 + $0x184] ss:$16 sps:$4 sm:$0xff]  }
 0x14c   :  { %1092 = vmatpush1.bf16.msra.mxu0 %v3092_v42  ;;  %1178 = vmatpush1.bf16.msra.mxu1 %v3095_v44  ;;  %v3187_v42 = vld [vmem:[#allocation4 + $0x18c] ss:$16 sps:$4 sm:$0xff]   ;;  %v3182_v44 = vld [vmem:[#allocation4 + $0x180] ss:$16 sps:$4 sm:$0xff]  }
 0x14d   :  { %1093 = vmatprep.subr.bf16.mxu0 %v3100_v45  ;;  %1179 = vmatprep.subr.bf16.mxu1 %v3103_v46  ;;  %v3185_v45 = vld [vmem:[#allocation4 + $0x188] ss:$16 sps:$4 sm:$0xff]   ;;  %v3190_v46 = vld [vmem:[#allocation4 + $0x1a4] ss:$16 sps:$4 sm:$0xff]  }
 0x150   :  { %1094 = vmatpush1.bf16.msra.mxu0 %v3098_v47  ;;  %1180 = vmatpush1.bf16.msra.mxu1 %v3101_v48  ;;  %v3193_v47 = vld [vmem:[#allocation4 + $0x1ac] ss:$16 sps:$4 sm:$0xff]   ;;  %v3188_v48 = vld [vmem:[#allocation4 + $0x1a0] ss:$16 sps:$4 sm:$0xff]  }
 0x151   :  { %1095 = vmatprep.subr.bf16.mxu0 %v3106_v49  ;;  %1181 = vmatprep.subr.bf16.mxu1 %v3109_v50  ;;  %v3191_v49 = vld [vmem:[#allocation4 + $0x1a8] ss:$16 sps:$4 sm:$0xff]   ;;  %v3196_v50 = vld [vmem:[#allocation4 + $0x1c4] ss:$16 sps:$4 sm:$0xff]  }
 0x154   :  { %1096 = vmatpush1.bf16.msra.mxu0 %v3104_v51  ;;  %1182 = vmatpush1.bf16.msra.mxu1 %v3107_v52  ;;  %v3194_v51 = vld [vmem:[#allocation4 + $0x1c0] ss:$16 sps:$4 sm:$0xff]   ;;  %v3197_v52 = vld [vmem:[#allocation4 + $0x1c8] ss:$16 sps:$4 sm:$0xff]  }
 0x155   :  { %1992 = vmatprep.subr.bf16.mxu0 %v3112_v53  ;;  %2078 = vmatprep.subr.bf16.mxu1 %v3115_v54  ;;  %v3199_v53 = vld [vmem:[#allocation4 + $0x1cc] ss:$16 sps:$4 sm:$0xff]   ;;  %v3202_v54 = vld [vmem:[#allocation4 + $0x1e4] ss:$16 sps:$4 sm:$0xff]  }
 0x157   :  { %1098 = vmatmul.mubr.bf16.vlgmr.msra.gmra.mrb[4].mxu0 %v3341_v56  ;;  %1184 = vmatmul.mubr.bf16.vlgmr.msra.gmra.mrb[4].mxu1 %v3341_v56  ;;  %v3211_v56 = vld [vmem:[#allocation4 + $0x20c] ss:$16 sps:$4 sm:$0xff]  }
 0x158   :  { %1993 = vmatpush1.bf16.msra.mxu0 %v3110_v35  ;;  %2079 = vmatpush1.bf16.msra.mxu1 %v3113_v40  ;;  %v3205_v35 = vld [vmem:[#allocation4 + $0x1ec] ss:$16 sps:$4 sm:$0xff]   ;;  %v3200_v40 = vld [vmem:[#allocation4 + $0x1e0] ss:$16 sps:$4 sm:$0xff]  }
 0x159   :  { %1994 = vmatprep.subr.bf16.mxu0 %v3118_v43  ;;  %2080 = vmatprep.subr.bf16.mxu1 %v3121_v55  ;;  %v3203_v43 = vld [vmem:[#allocation4 + $0x1e8] ss:$16 sps:$4 sm:$0xff]   ;;  %v3208_v55 = vld [vmem:[#allocation4 + $0x204] ss:$16 sps:$4 sm:$0xff]  }
 0x15c   :  { %1995 = vmatpush1.bf16.msra.mxu0 %v3116_v57  ;;  %2081 = vmatpush1.bf16.msra.mxu1 %v3119_v58  ;;  %v360_v57 = vld [vmem:[%s3673_s4] sm:$0xf] }
 0x15d   :  { %1996 = vmatprep.subr.bf16.mxu0 %v3124_v59  ;;  %2082 = vmatprep.subr.bf16.mxu1 %v3127_v60  ;;  %v365_v58 = vrot.slane %v360_v57, %v3517_v16  ;;  %v373_v59 = vrot.slane %v360_v57, %v3524_v19 }
 0x160   :  { %1997 = vmatpush1.bf16.msra.mxu0 %v3122_v61  ;;  %2083 = vmatpush1.bf16.msra.mxu1 %v3125_v62  ;;  %v369_v62 = vrot.slane %v360_v57, %v3522_v18 }
 0x161   :  { %1998 = vmatprep.subr.bf16.mxu0 %v3130_v63  ;;  %2084 = vmatprep.subr.bf16.mxu1 %v3133_v0  ;;  %v377_v63 = vrot.slane %v360_v57, %v3526_v20  ;;  %v3254_v57 = vld [vmem:[#allocation4 + $0x300] ss:$16 sps:$4 sm:$0xff]  }
 0x164   :  { %1999 = vmatpush1.bf16.msra.mxu0 %v3128_v1  ;;  %2085 = vmatpush1.bf16.msra.mxu1 %v3131_v2 }
 0x165   :  { %2000 = vmatprep.subr.bf16.mxu0 %v3136_v3  ;;  %2086 = vmatprep.subr.bf16.mxu1 %v3139_v4 }
 0x168   :  { %2001 = vmatpush1.bf16.msra.mxu0 %v3134_v5  ;;  %2087 = vmatpush1.bf16.msra.mxu1 %v3137_v6 }
 0x169   :  { %2002 = vmatprep.subr.bf16.mxu0 %v3142_v7  ;;  %2088 = vmatprep.subr.bf16.mxu1 %v3145_v8 }
 0x16c   :  { %2003 = vmatpush1.bf16.msra.mxu0 %v3140_v9  ;;  %2089 = vmatpush1.bf16.msra.mxu1 %v3143_v10 }
 0x16d   :  { %2004 = vmatprep.subr.bf16.mxu0 %v3148_v11  ;;  %2090 = vmatprep.subr.bf16.mxu1 %v3151_v12 }
 0x170   :  { %2005 = vmatpush1.bf16.msra.mxu0 %v3146_v13  ;;  %2091 = vmatpush1.bf16.msra.mxu1 %v3149_v14 }
 0x171   :  { %2006 = vmatprep.subr.bf16.mxu0 %v3154_v15  ;;  %2092 = vmatprep.subr.bf16.mxu1 %v3157_v17 }
 0x174   :  { %2007 = vmatpush1.bf16.msra.mxu0 %v3152_v21  ;;  %2093 = vmatpush1.bf16.msra.mxu1 %v3155_v22  ;;  %v3206_v22 = vld [vmem:[#allocation4 + $0x200] ss:$16 sps:$4 sm:$0xff]  }
 0x175   :  { %2008 = vmatprep.subr.bf16.mxu0 %v3160_v23  ;;  %2094 = vmatprep.subr.bf16.mxu1 %v3163_v24  ;;  %v3209_v23 = vld [vmem:[#allocation4 + $0x208] ss:$16 sps:$4 sm:$0xff]  }
 0x178   :  { %2009 = vmatpush1.bf16.msra.mxu0 %v3158_v25  ;;  %2095 = vmatpush1.bf16.msra.mxu1 %v3161_v26  ;;  %v3214_v26 = vld [vmem:[#allocation4 + $0x224] ss:$16 sps:$4 sm:$0xff]  }
 0x179   :  { %2010 = vmatprep.subr.bf16.mxu0 %v3166_v27  ;;  %2096 = vmatprep.subr.bf16.mxu1 %v3169_v28  ;;  %v3217_v27 = vld [vmem:[#allocation4 + $0x22c] ss:$16 sps:$4 sm:$0xff]  }
 0x17c   :  { %2011 = vmatpush1.bf16.msra.mxu0 %v3164_v29  ;;  %2097 = vmatpush1.bf16.msra.mxu1 %v3167_v30  ;;  %v3212_v29 = vld [vmem:[#allocation4 + $0x220] ss:$16 sps:$4 sm:$0xff]   ;;  %v3215_v30 = vld [vmem:[#allocation4 + $0x228] ss:$16 sps:$4 sm:$0xff]  }
 0x17d   :  { %2012 = vmatprep.subr.bf16.mxu0 %v3172_v31  ;;  %2098 = vmatprep.subr.bf16.mxu1 %v3175_v32  ;;  %v3220_v31 = vld [vmem:[#allocation4 + $0x244] ss:$16 sps:$4 sm:$0xff]   ;;  %v3223_v32 = vld [vmem:[#allocation4 + $0x24c] ss:$16 sps:$4 sm:$0xff]  }
 0x180   :  { %2013 = vmatpush1.bf16.msra.mxu0 %v3170_v33  ;;  %2099 = vmatpush1.bf16.msra.mxu1 %v3173_v34  ;;  %v3218_v33 = vld [vmem:[#allocation4 + $0x240] ss:$16 sps:$4 sm:$0xff]   ;;  %v3221_v34 = vld [vmem:[#allocation4 + $0x248] ss:$16 sps:$4 sm:$0xff]  }
 0x181   :  { %2014 = vmatprep.subr.bf16.mxu0 %v3178_v36  ;;  %2100 = vmatprep.subr.bf16.mxu1 %v3181_v37  ;;  %v3226_v36 = vld [vmem:[#allocation4 + $0x264] ss:$16 sps:$4 sm:$0xff]   ;;  %v3229_v37 = vld [vmem:[#allocation4 + $0x26c] ss:$16 sps:$4 sm:$0xff]  }
 0x184   :  { %2015 = vmatpush1.bf16.msra.mxu0 %v3176_v38  ;;  %2101 = vmatpush1.bf16.msra.mxu1 %v3179_v39  ;;  %v3224_v38 = vld [vmem:[#allocation4 + $0x260] ss:$16 sps:$4 sm:$0xff]   ;;  %v3227_v39 = vld [vmem:[#allocation4 + $0x268] ss:$16 sps:$4 sm:$0xff]  }
 0x185   :  { %2016 = vmatprep.subr.bf16.mxu0 %v3184_v41  ;;  %2102 = vmatprep.subr.bf16.mxu1 %v3187_v42  ;;  %v3232_v41 = vld [vmem:[#allocation4 + $0x284] ss:$16 sps:$4 sm:$0xff]   ;;  %v3235_v42 = vld [vmem:[#allocation4 + $0x28c] ss:$16 sps:$4 sm:$0xff]  }
 0x188   :  { %2017 = vmatpush1.bf16.msra.mxu0 %v3182_v44  ;;  %2103 = vmatpush1.bf16.msra.mxu1 %v3185_v45  ;;  %v3230_v44 = vld [vmem:[#allocation4 + $0x280] ss:$16 sps:$4 sm:$0xff]   ;;  %v3233_v45 = vld [vmem:[#allocation4 + $0x288] ss:$16 sps:$4 sm:$0xff]  }
 0x189   :  { %2018 = vmatprep.subr.bf16.mxu0 %v3190_v46  ;;  %2104 = vmatprep.subr.bf16.mxu1 %v3193_v47  ;;  %v3238_v46 = vld [vmem:[#allocation4 + $0x2a4] ss:$16 sps:$4 sm:$0xff]   ;;  %v3241_v47 = vld [vmem:[#allocation4 + $0x2ac] ss:$16 sps:$4 sm:$0xff]  }
 0x18c   :  { %2019 = vmatpush1.bf16.msra.mxu0 %v3188_v48  ;;  %2105 = vmatpush1.bf16.msra.mxu1 %v3191_v49  ;;  %v3236_v48 = vld [vmem:[#allocation4 + $0x2a0] ss:$16 sps:$4 sm:$0xff]   ;;  %v3239_v49 = vld [vmem:[#allocation4 + $0x2a8] ss:$16 sps:$4 sm:$0xff]  }
 0x18d   :  { %2020 = vmatprep.subr.bf16.mxu0 %v3196_v50  ;;  %2106 = vmatprep.subr.bf16.mxu1 %v3199_v53  ;;  %v3244_v50 = vld [vmem:[#allocation4 + $0x2c4] ss:$16 sps:$4 sm:$0xff]   ;;  %v3245_v53 = vld [vmem:[#allocation4 + $0x2c8] ss:$16 sps:$4 sm:$0xff]  }
 0x190   :  { %2021 = vmatpush1.bf16.msra.mxu0 %v3194_v51  ;;  %2107 = vmatpush1.bf16.msra.mxu1 %v3197_v52  ;;  %v3247_v51 = vld [vmem:[#allocation4 + $0x2cc] ss:$16 sps:$4 sm:$0xff]   ;;  %v3242_v52 = vld [vmem:[#allocation4 + $0x2c0] ss:$16 sps:$4 sm:$0xff]  }
 0x191   :  { %2022 = vmatprep.subr.bf16.mxu0 %v3202_v54  ;;  %2108 = vmatprep.subr.bf16.mxu1 %v3205_v35  ;;  %v3250_v54 = vld [vmem:[#allocation4 + $0x2e4] ss:$16 sps:$4 sm:$0xff]   ;;  %v3253_v35 = vld [vmem:[#allocation4 + $0x2ec] ss:$16 sps:$4 sm:$0xff]  }
 0x194   :  { %2023 = vmatpush1.bf16.msra.mxu0 %v3200_v40  ;;  %2109 = vmatpush1.bf16.msra.mxu1 %v3203_v43  ;;  %v3248_v40 = vld [vmem:[#allocation4 + $0x2e0] ss:$16 sps:$4 sm:$0xff]   ;;  %v3251_v43 = vld [vmem:[#allocation4 + $0x2e8] ss:$16 sps:$4 sm:$0xff]  }
 0x195   :  { %2035 = vmatprep.subr.bf16.mxu0 %v3208_v55  ;;  %2121 = vmatprep.subr.bf16.mxu1 %v3211_v56  ;;  %v3256_v55 = vld [vmem:[#allocation4 + $0x304] ss:$16 sps:$4 sm:$0xff]   ;;  %v3259_v56 = vld [vmem:[#allocation4 + $0x30c] ss:$16 sps:$4 sm:$0xff]  }
 0x22a   :  { %v1099_v60 = vpop.f32.mrb[4].mxu0  ;;  %v1185_v61 = vpop.f32.mrb[4].mxu1 }
 0x22b   :  { %v1101_v0 = vpop.f32.mrb[5].mxu0  ;;  %v1187_v1 = vpop.f32.mrb[5].mxu1  ;;  %v2869_v4 = vadd.f32 %v1099_v60, %v365_v58  ;;  %v3548_v5 = vadd.f32 %v1185_v61, %v373_v59  ;;  %v3265_v60 = vld [vmem:[#allocation4 + $0x32c] ss:$16 sps:$4 sm:$0xff]   ;;  %v3260_v61 = vld [vmem:[#allocation4 + $0x320] ss:$16 sps:$4 sm:$0xff]  }
 0x22c   :  { %v1103_v2 = vpop.f32.mrb[6].mxu0  ;;  %v1189_v3 = vpop.f32.mrb[6].mxu1  ;;  %v2870_v10 = vadd.f32 %v1101_v0, %v369_v62  ;;  %v2874_v11 = vadd.f32 %v1187_v1, %v377_v63  ;;  %v3271_v0 = vld [vmem:[#allocation4 + $0x34c] ss:$16 sps:$4 sm:$0xff]   ;;  %v3266_v1 = vld [vmem:[#allocation4 + $0x340] ss:$16 sps:$4 sm:$0xff]  }
 0x22d   :  { %v2871_v6 = vadd.f32 %v1103_v2, %v365_v58  ;;  %v3550_v7 = vadd.f32 %v1189_v3, %v373_v59  ;;  %v1105_v8 = vpop.f32.mrb[7].mxu0  ;;  %v1191_v9 = vpop.f32.mrb[7].mxu1  ;;  %v3257_v58 = vld [vmem:[#allocation4 + $0x308] ss:$16 sps:$4 sm:$0xff]   ;;  %v3262_v59 = vld [vmem:[#allocation4 + $0x324] ss:$16 sps:$4 sm:$0xff]  }
 0x22e   :  { %v2872_v12 = vadd.f32 %v1105_v8, %v369_v62  ;;  %v2876_v13 = vadd.f32 %v1191_v9, %v377_v63  ;;  %v3263_v62 = vld [vmem:[#allocation4 + $0x328] ss:$16 sps:$4 sm:$0xff]   ;;  %v3268_v63 = vld [vmem:[#allocation4 + $0x344] ss:$16 sps:$4 sm:$0xff]  }
 0x22f   :  { %v1194_v14 = vpack.c.bf16 %v2871_v6, %v2869_v4  ;;  %v1196_v15 = vpack.c.bf16 %v3550_v7, %v3548_v5  ;;  %v3269_v2 = vld [vmem:[#allocation4 + $0x348] ss:$16 sps:$4 sm:$0xff]   ;;  %v3274_v3 = vld [vmem:[#allocation4 + $0x364] ss:$16 sps:$4 sm:$0xff]   ;;  %v3277_v4 = vld [vmem:[#allocation4 + $0x36c] ss:$16 sps:$4 sm:$0xff]  }
 0x230   :  { %v1195_v17 = vpack.c.bf16 %v2872_v12, %v2870_v10  ;;  %v1197_v21 = vpack.c.bf16 %v2876_v13, %v2874_v11  ;;  %v3272_v6 = vld [vmem:[#allocation4 + $0x360] ss:$16 sps:$4 sm:$0xff]   ;;  %v3275_v8 = vld [vmem:[#allocation4 + $0x368] ss:$16 sps:$4 sm:$0xff]   ;;  %v3280_v9 = vld [vmem:[#allocation4 + $0x384] ss:$16 sps:$4 sm:$0xff]  }
 0x231   :  { %v3283_v10 = vld [vmem:[#allocation4 + $0x38c] ss:$16 sps:$4 sm:$0xff]   ;;  %v3278_v11 = vld [vmem:[#allocation4 + $0x380] ss:$16 sps:$4 sm:$0xff]   ;;  %v3281_v12 = vld [vmem:[#allocation4 + $0x388] ss:$16 sps:$4 sm:$0xff]  }
 0x232   :  { %3342 = vtanh.bf16 %v1195_v17  ;;  %v3286_v13 = vld [vmem:[#allocation4 + $0x3a4] ss:$16 sps:$4 sm:$0xff]   ;;  %v3284_v17 = vld [vmem:[#allocation4 + $0x3a0] ss:$16 sps:$4 sm:$0xff]  }
 0x233   :  { %3344 = vtanh.bf16 %v1194_v14  ;;  %v3289_v14 = vld [vmem:[#allocation4 + $0x3ac] ss:$16 sps:$4 sm:$0xff]   ;;  %v3303_v5 = vld [vmem:[%s3676_s7 + $0xc0] sm:$0xff]  }
 0x234   :  { %3346 = vtanh.bf16 %v1197_v21  ;;  %v3287_v21 = vld [vmem:[#allocation4 + $0x3a8] ss:$16 sps:$4 sm:$0xff]   ;;  %v3304_v7 = vld [vmem:[%s3676_s7] sm:$0xff]  }
 0x235   :  { %3348 = vtanh.bf16 %v1196_v15  ;;  %v3305_v15 = vld [vmem:[%s3676_s7 + $0x80] sm:$0xff]  }
 0x23d   :  { %v3343_v24 = vpop.eup %3342 }
 0x23e   :  { %v3345_v25 = vpop.eup %3344  ;;  %2024 = vmatprep.mubr.bf16.mxu0 %v3343_v24  ;;  %2110 = vmatprep.mubr.bf16.mxu1 %v3343_v24  ;;  %v3290_v24 = vld [vmem:[#allocation4 + $0x3c0] ss:$16 sps:$4 sm:$0xff]  }
 0x23f   :  { %2025 = vmatmul.mubr.bf16.vlgmr.msra.gmra.mrb[8].mxu0 %v3345_v25  ;;  %2111 = vmatmul.mubr.bf16.vlgmr.msra.gmra.mrb[8].mxu1 %v3345_v25  ;;  %v3347_v28 = vpop.eup %3346  ;;  %v3293_v25 = vld [vmem:[#allocation4 + $0x3c8] ss:$16 sps:$4 sm:$0xff]  }
 0x240   :  { %2036 = vmatpush1.bf16.msra.mxu0 %v3206_v22  ;;  %2122 = vmatpush1.bf16.msra.mxu1 %v3209_v23  ;;  %v3292_v22 = vld [vmem:[#allocation4 + $0x3c4] ss:$16 sps:$4 sm:$0xff]   ;;  %v3295_v23 = vld [vmem:[#allocation4 + $0x3cc] ss:$16 sps:$4 sm:$0xff]  }
 0x241   :  { %2067 = vmatprep.mubr.bf16.mxu0 %v3347_v28  ;;  %2153 = vmatprep.mubr.bf16.mxu1 %v3347_v28  ;;  %v3296_v28 = vld [vmem:[#allocation4 + $0x3e0] ss:$16 sps:$4 sm:$0xff]  }
 0x242   :  { %2037 = vmatprep.subr.bf16.mxu0 %v3214_v26  ;;  %2123 = vmatprep.subr.bf16.mxu1 %v3217_v27  ;;  %v3298_v26 = vld [vmem:[#allocation4 + $0x3e4] ss:$16 sps:$4 sm:$0xff]   ;;  %v3301_v27 = vld [vmem:[#allocation4 + $0x3ec] ss:$16 sps:$4 sm:$0xff]  }
 0x244   :  { %2038 = vmatpush1.bf16.msra.mxu0 %v3212_v29  ;;  %2124 = vmatpush1.bf16.msra.mxu1 %v3215_v30  ;;  %v3299_v29 = vld [vmem:[#allocation4 + $0x3e8] ss:$16 sps:$4 sm:$0xff]   ;;  %v3302_v30 = vld [vmem:[%s3676_s7 + $0x40] sm:$0xff]  }
 0x245   :  { %2039 = vmatprep.subr.bf16.mxu0 %v3220_v31  ;;  %2125 = vmatprep.subr.bf16.mxu1 %v3223_v32  ;;  %v3306_v31 = vld [vmem:[%s3676_s7 + $0x48] sm:$0xff]  }
 0x246   :  { %v3307_v32 = vld [vmem:[%s3676_s7 + $0xc8] sm:$0xff]  }
 0x248   :  { %2040 = vmatpush1.bf16.msra.mxu0 %v3218_v33  ;;  %2126 = vmatpush1.bf16.msra.mxu1 %v3221_v34  ;;  %v3349_v33 = vpop.eup %3348  ;;  %v3308_v34 = vld [vmem:[%s3676_s7 + $0x8] sm:$0xff]  }
 0x249   :  { %2041 = vmatprep.subr.bf16.mxu0 %v3226_v36  ;;  %2127 = vmatprep.subr.bf16.mxu1 %v3229_v37  ;;  %v3309_v36 = vld [vmem:[%s3676_s7 + $0x88] sm:$0xff]   ;;  %v3310_v37 = vld [vmem:[%s3676_s7 + $0x50] sm:$0xff]  }
 0x24c   :  { %2042 = vmatpush1.bf16.msra.mxu0 %v3224_v38  ;;  %2128 = vmatpush1.bf16.msra.mxu1 %v3227_v39  ;;  %v3311_v38 = vld [vmem:[%s3676_s7 + $0xd0] sm:$0xff]  }
 0x24d   :  { %2043 = vmatprep.subr.bf16.mxu0 %v3232_v41  ;;  %2129 = vmatprep.subr.bf16.mxu1 %v3235_v42  ;;  %v3312_v39 = vld [vmem:[%s3676_s7 + $0x10] sm:$0xff]   ;;  %v3314_v42 = vld [vmem:[%s3676_s7 + $0x58] sm:$0xff]  }
 0x24e   :  { %v3313_v41 = vld [vmem:[%s3676_s7 + $0x90] sm:$0xff]  }
 0x250   :  { %2044 = vmatpush1.bf16.msra.mxu0 %v3230_v44  ;;  %2130 = vmatpush1.bf16.msra.mxu1 %v3233_v45  ;;  %v3315_v44 = vld [vmem:[%s3676_s7 + $0xd8] sm:$0xff]  }
 0x251   :  { %2045 = vmatprep.subr.bf16.mxu0 %v3238_v46  ;;  %2131 = vmatprep.subr.bf16.mxu1 %v3241_v47  ;;  %v3316_v45 = vld [vmem:[%s3676_s7 + $0x18] sm:$0xff]   ;;  %v3318_v47 = vld [vmem:[%s3676_s7 + $0x60] sm:$0xff]  }
 0x252   :  { %v3317_v46 = vld [vmem:[%s3676_s7 + $0x98] sm:$0xff]  }
 0x254   :  { %2046 = vmatpush1.bf16.msra.mxu0 %v3236_v48  ;;  %2132 = vmatpush1.bf16.msra.mxu1 %v3239_v49  ;;  %v3319_v48 = vld [vmem:[%s3676_s7 + $0xe0] sm:$0xff]  }
 0x255   :  { %2047 = vmatprep.subr.bf16.mxu0 %v3244_v50  ;;  %2133 = vmatprep.subr.bf16.mxu1 %v3247_v51  ;;  %v3320_v49 = vld [vmem:[%s3676_s7 + $0x20] sm:$0xff]   ;;  %v3322_v51 = vld [vmem:[%s3676_s7 + $0x68] sm:$0xff]  }
 0x256   :  { %v3321_v50 = vld [vmem:[%s3676_s7 + $0xa0] sm:$0xff]  }
 0x258   :  { %2048 = vmatpush1.bf16.msra.mxu0 %v3242_v52  ;;  %2134 = vmatpush1.bf16.msra.mxu1 %v3245_v53  ;;  %v3323_v52 = vld [vmem:[%s3676_s7 + $0xe8] sm:$0xff]  }
 0x259   :  { %2049 = vmatprep.subr.bf16.mxu0 %v3250_v54  ;;  %2135 = vmatprep.subr.bf16.mxu1 %v3253_v35  ;;  %v3324_v53 = vld [vmem:[%s3676_s7 + $0x28] sm:$0xff]   ;;  %v3326_v35 = vld [vmem:[%s3676_s7 + $0x70] sm:$0xff]  }
 0x25a   :  { %v3325_v54 = vld [vmem:[%s3676_s7 + $0xa8] sm:$0xff]  }
 0x25c   :  { %2050 = vmatpush1.bf16.msra.mxu0 %v3248_v40  ;;  %2136 = vmatpush1.bf16.msra.mxu1 %v3251_v43  ;;  %v3327_v40 = vld [vmem:[%s3676_s7 + $0xf0] sm:$0xff]  }
 0x25d   :  { %2051 = vmatprep.subr.bf16.mxu0 %v3256_v55  ;;  %2137 = vmatprep.subr.bf16.mxu1 %v3259_v56  ;;  %v3328_v43 = vld [vmem:[%s3676_s7 + $0x30] sm:$0xff]   ;;  %v3330_v56 = vld [vmem:[%s3676_s7 + $0x78] sm:$0xff]  }
 0x25e   :  { %v3329_v55 = vld [vmem:[%s3676_s7 + $0xb0] sm:$0xff]  }
 0x260   :  { %2052 = vmatpush1.bf16.msra.mxu0 %v3254_v57  ;;  %2138 = vmatpush1.bf16.msra.mxu1 %v3257_v58  ;;  %v3331_v57 = vld [vmem:[%s3676_s7 + $0xf8] sm:$0xff]  }
 0x261   :  { %2053 = vmatprep.subr.bf16.mxu0 %v3262_v59  ;;  %2139 = vmatprep.subr.bf16.mxu1 %v3265_v60  ;;  %v3332_v58 = vld [vmem:[%s3676_s7 + $0x38] sm:$0xff]   ;;  %v1330_v60 = vld [vmem:[%s3675_s6] sm:$0xf] }
 0x262   :  { %v3333_v59 = vld [vmem:[%s3676_s7 + $0xb8] sm:$0xff]  }
 0x264   :  { %2054 = vmatpush1.bf16.msra.mxu0 %v3260_v61  ;;  %2140 = vmatpush1.bf16.msra.mxu1 %v3263_v62  ;;  %v1335_v61 = vrot.slane %v1330_v60, %v3517_v16  ;;  %v1343_v62 = vrot.slane %v1330_v60, %v3524_v19 }
 0x265   :  { %2055 = vmatprep.subr.bf16.mxu0 %v3268_v63  ;;  %2141 = vmatprep.subr.bf16.mxu1 %v3271_v0 }
 0x268   :  { %2056 = vmatpush1.bf16.msra.mxu0 %v3266_v1  ;;  %2142 = vmatpush1.bf16.msra.mxu1 %v3269_v2  ;;  %v1339_v1 = vrot.slane %v1330_v60, %v3522_v18  ;;  %v1347_v2 = vrot.slane %v1330_v60, %v3526_v20 }
 0x269   :  { %2057 = vmatprep.subr.bf16.mxu0 %v3274_v3  ;;  %2143 = vmatprep.subr.bf16.mxu1 %v3277_v4 }
 0x26c   :  { %2058 = vmatpush1.bf16.msra.mxu0 %v3272_v6  ;;  %2144 = vmatpush1.bf16.msra.mxu1 %v3275_v8 }
 0x26d   :  { %2059 = vmatprep.subr.bf16.mxu0 %v3280_v9  ;;  %2145 = vmatprep.subr.bf16.mxu1 %v3283_v10 }
 0x270   :  { %2060 = vmatpush1.bf16.msra.mxu0 %v3278_v11  ;;  %2146 = vmatpush1.bf16.msra.mxu1 %v3281_v12 }
 0x271   :  { %2061 = vmatprep.subr.bf16.mxu0 %v3286_v13  ;;  %2147 = vmatprep.subr.bf16.mxu1 %v3289_v14 }
 0x274   :  { %2062 = vmatpush1.bf16.msra.mxu0 %v3284_v17  ;;  %2148 = vmatpush1.bf16.msra.mxu1 %v3287_v21 }
 0x275   :  { %2063 = vmatprep.subr.bf16.mxu0 %v3292_v22  ;;  %2149 = vmatprep.subr.bf16.mxu1 %v3295_v23 }
 0x278   :  { %2064 = vmatpush1.bf16.msra.mxu0 %v3290_v24  ;;  %2150 = vmatpush1.bf16.msra.mxu1 %v3293_v25 }
 0x279   :  { %2065 = vmatprep.subr.bf16.mxu0 %v3298_v26  ;;  %2151 = vmatprep.subr.bf16.mxu1 %v3301_v27 }
 0x27c   :  { %2066 = vmatpush1.bf16.msra.mxu0 %v3296_v28  ;;  %2152 = vmatpush1.bf16.msra.mxu1 %v3299_v29 }
 0x27d   :  { %2825 = vmatprep.subr.bf16.mxu0 %v3302_v30  ;;  %2847 = vmatprep.subr.bf16.mxu1 %v3303_v5  ;;  %v2792_v30 = vld [vmem:[%s3677_s8] ss:$0 sm:$0xff] }
 0x27f   :  { %2068 = vmatmul.mubr.bf16.vlgmr.msra.gmra.mrb[8].mxu0 %v3349_v33  ;;  %2154 = vmatmul.mubr.bf16.vlgmr.msra.gmra.mrb[8].mxu1 %v3349_v33 }
 0x280   :  { %2826 = vmatpush3.bf16.msra.mxu0 %v3304_v7  ;;  %2848 = vmatpush3.bf16.msra.mxu1 %v3305_v15 }
 0x281   :  { %2827 = vmatprep.subr.bf16.mxu0 %v3306_v31  ;;  %2849 = vmatprep.subr.bf16.mxu1 %v3307_v32 }
 0x284   :  { %2828 = vmatpush3.bf16.msra.mxu0 %v3308_v34  ;;  %2850 = vmatpush3.bf16.msra.mxu1 %v3309_v36 }
 0x285   :  { %2829 = vmatprep.subr.bf16.mxu0 %v3310_v37  ;;  %2851 = vmatprep.subr.bf16.mxu1 %v3311_v38 }
 0x288   :  { %2830 = vmatpush3.bf16.msra.mxu0 %v3312_v39  ;;  %2852 = vmatpush3.bf16.msra.mxu1 %v3313_v41 }
 0x289   :  { %2831 = vmatprep.subr.bf16.mxu0 %v3314_v42  ;;  %2853 = vmatprep.subr.bf16.mxu1 %v3315_v44 }
 0x28c   :  { %2832 = vmatpush3.bf16.msra.mxu0 %v3316_v45  ;;  %2854 = vmatpush3.bf16.msra.mxu1 %v3317_v46 }
 0x28d   :  { %2833 = vmatprep.subr.bf16.mxu0 %v3318_v47  ;;  %2855 = vmatprep.subr.bf16.mxu1 %v3319_v48 }
 0x290   :  { %2834 = vmatpush3.bf16.msra.mxu0 %v3320_v49  ;;  %2856 = vmatpush3.bf16.msra.mxu1 %v3321_v50 }
 0x291   :  { %2835 = vmatprep.subr.bf16.mxu0 %v3322_v51  ;;  %2857 = vmatprep.subr.bf16.mxu1 %v3323_v52 }
 0x294   :  { %2836 = vmatpush3.bf16.msra.mxu0 %v3324_v53  ;;  %2858 = vmatpush3.bf16.msra.mxu1 %v3325_v54 }
 0x295   :  { %2837 = vmatprep.subr.bf16.mxu0 %v3326_v35  ;;  %2859 = vmatprep.subr.bf16.mxu1 %v3327_v40 }
 0x298   :  { %2838 = vmatpush3.bf16.msra.mxu0 %v3328_v43  ;;  %2860 = vmatpush3.bf16.msra.mxu1 %v3329_v55 }
 0x299   :  { %2839 = vmatprep.subr.bf16.mxu0 %v3330_v56  ;;  %2861 = vmatprep.subr.bf16.mxu1 %v3331_v57 }
 0x29c   :  { %2840 = vmatpush3.bf16.msra.mxu0 %v3332_v58  ;;  %2862 = vmatpush3.bf16.msra.mxu1 %v3333_v59 }
 0x352   :  { %v2069_v63 = vpop.f32.mrb[8].mxu0  ;;  %v2155_v0 = vpop.f32.mrb[8].mxu1 }
 0x353   :  { %v2071_v3 = vpop.f32.mrb[9].mxu0  ;;  %v2157_v4 = vpop.f32.mrb[9].mxu1  ;;  %v2877_v9 = vadd.f32 %v2069_v63, %v1335_v61  ;;  %v2881_v10 = vadd.f32 %v2155_v0, %v1343_v62 }
 0x354   :  { %v2073_v6 = vpop.f32.mrb[10].mxu0  ;;  %v2159_v8 = vpop.f32.mrb[10].mxu1  ;;  %v2878_v17 = vadd.f32 %v2071_v3, %v1339_v1  ;;  %v2882_v16 = vadd.f32 %v2157_v4, %v1347_v2 }
 0x355   :  { %v2879_v11 = vadd.f32 %v2073_v6, %v1335_v61  ;;  %v2883_v12 = vadd.f32 %v2159_v8, %v1343_v62  ;;  %v2075_v13 = vpop.f32.mrb[11].mxu0  ;;  %v2161_v14 = vpop.f32.mrb[11].mxu1 }
 0x356   :  { %v2880_v21 = vadd.f32 %v2075_v13, %v1339_v1  ;;  %v2884_v19 = vadd.f32 %v2161_v14, %v1347_v2 }
 0x357   :  { %v2164_v22 = vpack.c.bf16 %v2879_v11, %v2877_v9  ;;  %v2166_v23 = vpack.c.bf16 %v2883_v12, %v2881_v10 }
 0x358   :  { %v2165_v24 = vpack.c.bf16 %v2880_v21, %v2878_v17  ;;  %v2167_v18 = vpack.c.bf16 %v2884_v19, %v2882_v16 }
 0x359   :  { %3350 = vtanh.bf16 %v2164_v22 }
 0x35a   :  { %3352 = vtanh.bf16 %v2165_v24 }
 0x35b   :  { %3354 = vtanh.bf16 %v2167_v18 }
 0x35c   :  { %3356 = vtanh.bf16 %v2166_v23 }
 0x364   :  { %v3351_v20 = vpop.eup %3350 }
 0x365   :  { %v3353_v25 = vpop.eup %3352 }
 0x366   :  { %v3355_v26 = vpop.eup %3354  ;;  %2467 = vmatprep.mubr.bf16.mxu0 %v3353_v25 }
 0x367   :  { %v3357_v27 = vpop.eup %3356  ;;  %2508 = vmatprep.mubr.bf16.mxu1 %v3355_v26  ;;  %2468 = vmatmul.mubr.bf16.vlgmr.msra.gmra.mrb[12].mxu0 %v3351_v20 }
 0x368   :  { %2509 = vmatmul.mubr.bf16.vlgmr.msra.gmra.mrb[12].mxu1 %v3357_v27 }
 0x43a   :  { %v2841_v28 = vpop.f32.mrb[12].mxu0 }
 0x43b   :  { %v2863_v29 = vpop.f32.mrb[12].mxu1  ;;  %v2842_v5 = vpop.f32.mrb[13].mxu0 }
 0x43c   :  { %v2843_v7 = vadd.f32 %v2842_v5, %v2841_v28  ;;  %v2864_v15 = vpop.f32.mrb[13].mxu1  ;;  %v2844_v31 = vpop.f32.mrb[14].mxu0 }
 0x43d   :  { %v2865_v32 = vadd.f32 %v2864_v15, %v2863_v29  ;;  %v2866_v33 = vpop.f32.mrb[14].mxu1  ;;  %v2845_v34 = vpop.f32.mrb[15].mxu0 }
 0x43e   :  { %v2470_v36 = vadd.f32 %v2843_v7, %v2792_v30  ;;  %v2846_v37 = vadd.f32 %v2845_v34, %v2844_v31  ;;  %v2867_v38 = vpop.f32.mrb[15].mxu1 }
 0x43f   :  { %v2868_v39 = vadd.f32 %v2867_v38, %v2866_v33 }
 0x440   :  { %v2511_v41 = vadd.f32 %v2865_v32, %v2470_v36  ;;  %v2473_v42 = vadd.f32 %v2846_v37, %v2792_v30 }
 0x442   :  { %2518 = vst.msk [vmem:[%s3678_s9] sm:$0xff] %vm2517_vm1, %v2511_v41  ;;  %v2514_v44 = vadd.f32 %v2868_v39, %v2473_v42 }
 0x444   :  { %2519 = vst.msk [vmem:[%s3678_s9 + $0x8] sm:$0xff] %vm2517_vm1, %v2514_v44 }
 0x445   :  { %2524 = vsyncpa [#allocation3], 1 }
 0x446   :  { %2525 = vsyncpa [#allocation5], 1 }

</bundles_post_ra>
